<compile_context>
chip_gen: v6e
topology: v6e:2x2x1
jax: 0.10.0
libtpu: 0.0.40
codegen_flags: <defaults>
</compile_context>

<pallas_src>
import jax
import jax.numpy as jnp
import numpy as np
from jax.experimental import pallas as pl
from jax.experimental.pallas import tpu as pltpu

# ----------------------- configuration (small shapes) -----------------------
BATCH = 2
IN_CH = 1
HEIGHT = 16
WIDTH = 8
CONV_KERNELS = 8          # conv1 out channels; conv2 out = 2 * CONV_KERNELS
KERNEL_SIZE = 4
LSTM_UNITS = 32
N_CLASSES = 8
BN_EPS = 1e-5


# --------------------- single fused Pallas kernel ----------------------------
def _fused_forward_kernel(xcol1_ref, w1s_ref, sh1_ref, w2s_ref, sh2_ref,
                          perm_ref, wih_ref, bg_ref, whh_ref, wcls_ref,
                          bcls_ref, feat_ref, out_ref):
    f32 = jnp.float32
    B, nH = feat_ref.shape
    fourH = whh_ref.shape[0]
    K, C1, C2 = w2s_ref.shape
    D = wih_ref.shape[0]
    W = D // C2
    BW = B * W
    M1 = xcol1_ref.shape[0]          # = Ho1 * B * W
    Ho1 = M1 // BW
    T = Ho1 // 2                     # conv2 output height (= LSTM steps)
    TB = T * B
    half = T * BW                    # rows per ho1-parity group of y1

    # ---- conv1 + BN1 + ReLU (BN scale already folded into w1s) ------------
    # rows of xcol1 / y1: [even ho1 | odd ho1], each ordered (j, b, w)
    y1 = jnp.maximum(
        jnp.dot(xcol1_ref[...], w1s_ref[...], preferred_element_type=f32)
        + sh1_ref[...], 0.0)                                     # (M1, C1)

    # ---- conv2 + BN2 + ReLU: K=4 taps via contiguous static slices --------
    # padded conv2 input row p = 2t + k;  even/odd p map to the odd/even ho1
    # groups of y1, so every tap is a contiguous row slice (+ zero pad rows).
    zblk = jnp.zeros((BW, C1), f32)
    tap0 = jnp.concatenate([zblk, y1[half:half + (T - 1) * BW]], axis=0)
    tap1 = y1[0:half]
    tap2 = y1[half:2 * half]
    tap3 = jnp.concatenate([y1[BW:half], zblk], axis=0)
    acc2 = (jnp.dot(tap0, w2s_ref[0], preferred_element_type=f32)
            + jnp.dot(tap1, w2s_ref[1], preferred_element_type=f32)
            + jnp.dot(tap2, w2s_ref[2], preferred_element_type=f32)
            + jnp.dot(tap3, w2s_ref[3], preferred_element_type=f32))
    y2 = jnp.maximum(acc2 + sh2_ref[...], 0.0)       # (T*B*W, C2), rows (t,b,w)

    # ---- LSTM input projection for ALL timesteps, before the recurrence ----
    # Reorder rows (t,b,w)->(w,t,b) with a 0/1 permutation matmul (MXU does the
    # shuffle), then contract each (w, c2) feature block with the matching
    # 16-row block of W_ih^T.  Result: xproj (T*B, 4H), gate order [f,i,o,g].
    y2p = jnp.dot(perm_ref[...], y2, preferred_element_type=f32)  # rows (w,t,b)
    wih = wih_ref[...]
    xproj = jnp.zeros((TB, fourH), f32)
    for w in range(W):
        xproj = xproj + jnp.dot(y2p[w * TB:(w + 1) * TB, :],
                                wih[w * C2:(w + 1) * C2, :],
                                preferred_element_type=f32)
    xproj = xproj + bg_ref[...]

    # ---- LSTM recurrence, fully unrolled (T steps) -------------------------
    # Gate lane blocks: [f | i | o | g] (each nH lanes).  Real h lives in lane
    # block 2, real c is replicated in blocks {0, 2}.  Activations run on the
    # full vreg (EUP); alignment uses only direction-independent rolls.
    lane = jax.lax.broadcasted_iota(jnp.int32, (B, fourH), 1)
    is_g = lane >= 3 * nH
    is_h = jnp.logical_and(lane >= 2 * nH, lane < 3 * nH)
    lo_half = lane < 2 * nH

    whh = whh_ref[...]                              # rows [2H,3H) = W_hh^T, else 0
    h_ext = jnp.zeros((B, fourH), f32)
    c_rep = jnp.zeros((B, fourH), f32)
    for t in range(T):
        gates = xproj[t * B:(t + 1) * B, :] + jnp.dot(
            h_ext, whh, preferred_element_type=f32)              # (B, 4H)
        act = jnp.where(is_g, jnp.tanh(gates), jax.nn.sigmoid(gates))  # [F,I,O,G]
        swapped = pltpu.roll(act, 2 * nH, axis=1)                # [O,G,F,I]
        prod = act * swapped                 # 2H-periodic; blocks 1,3 hold I*G
        ig = pltpu.roll(prod, nH, axis=1)    # I*G lands in blocks 0 and 2
        c_part = act * c_rep + ig            # block 0: F*c + I*G  (true new cell)
        c_rep = jnp.where(lo_half, c_part, pltpu.roll(c_part, 2 * nH, axis=1))
        h_ext = jnp.where(is_h, act * jnp.tanh(c_rep), 0.0)      # block 2: O*tanh(c)

    # ---- fused Linear classifier on the last hidden state ------------------
    feat_ref[...] = h_ext[:, 2 * nH:3 * nH]
    out_ref[...] = (jnp.dot(h_ext, wcls_ref[...], preferred_element_type=f32)
                    + bcls_ref[...])


# ------------------------------ full forward ---------------------------------
def deep_conv_lstm_forward(x_nchw, p):
    """Eval-mode DeepConvLSTM forward as a single fused Pallas TPU kernel."""
    f32 = jnp.float32
    B, _, Hin, W = x_nchw.shape
    C1 = p["conv1_w"].shape[0]
    C2 = p["conv2_w"].shape[0]
    K = p["conv1_w"].shape[2]
    nH = p["lstm_w_hh"].shape[1]
    fourH = 4 * nH
    nC = p["cls_w"].shape[0]
    Ho1 = (Hin + 2 - K) // 2 + 1                      # conv1 output height
    T = (Ho1 + 2 - K) // 2 + 1                        # conv2 output height

    # conv1 im2col on the raw input (only pre-kernel data prep).  Rows are
    # grouped by ho1 parity [even | odd] and ordered (j, b, w) inside a group,
    # so conv2's taps become contiguous slices inside the kernel.
    xpad = jnp.pad(x_nchw[:, 0].astype(f32), ((0, 0), (1, 1), (0, 0)))
    ho1_order = jnp.concatenate([jnp.arange(0, Ho1, 2), jnp.arange(1, Ho1, 2)])
    hidx = 2 * ho1_order[:, None] + jnp.arange(K)[None, :]       # (Ho1, K)
    patches = xpad[:, hidx, :]                                   # (B, Ho1, K, W)
    xcol1 = jnp.transpose(patches, (1, 0, 3, 2)).reshape(Ho1 * B * W, K)

    # fold eval-mode BatchNorm into the conv weights / shifts
    scale1 = p["bn1_gamma"] / jnp.sqrt(p["bn1_var"] + BN_EPS)
    w1s = (p["conv1_w"][:, 0, :, 0] * scale1[:, None]).T                 # (K, C1)
    shift1 = ((p["conv1_b"] - p["bn1_mean"]) * scale1
              + p["bn1_beta"]).reshape(1, C1)
    scale2 = p["bn2_gamma"] / jnp.sqrt(p["bn2_var"] + BN_EPS)
    w2s = jnp.transpose(p["conv2_w"][:, :, :, 0] * scale2[:, None, None],
                        (2, 1, 0))                                       # (K, C1, C2)
    shift2 = ((p["conv2_b"] - p["bn2_mean"]) * scale2
              + p["bn2_beta"]).reshape(1, C2)

    # 0/1 permutation matrix: row (w,t,b) <- row (t,b,w)  (applied on the MXU)
    n_rows = T * B * W
    r = jnp.arange(n_rows)
    src = (r % (T * B)) * W + r // (T * B)
    perm = jax.nn.one_hot(src, n_rows, dtype=f32)

    # LSTM / classifier weights: gate blocks reordered [i,f,g,o] -> [f,i,o,g];
    # recurrent & classifier weights zero-padded to 4H rows (h lives in block 2).
    def reorder_gates(m):
        return jnp.concatenate([m[nH:2 * nH], m[0:nH],
                                m[3 * nH:4 * nH], m[2 * nH:3 * nH]], axis=0)

    wih_t = reorder_gates(p["lstm_w_ih"]).T.astype(f32)                  # (D, 4H)
    b_gates = reorder_gates(p["lstm_b_ih"]
                            + p["lstm_b_hh"]).reshape(1, fourH).astype(f32)
    whh_ext = jnp.zeros((fourH, fourH), f32).at[2 * nH:3 * nH].set(
        reorder_gates(p["lstm_w_hh"]).T)
    wcls_ext = jnp.zeros((fourH, nC), f32).at[2 * nH:3 * nH].set(p["cls_w"].T)
    bcls = p["cls_b"].reshape(1, nC).astype(f32)

    # TODO(synk): Dropout(0.2) is training-time stochastic; identity in eval mode.
    feat, logits = pl.pallas_call(
        _fused_forward_kernel,
        out_shape=(jax.ShapeDtypeStruct((B, nH), f32),
                   jax.ShapeDtypeStruct((B, nC), f32)),
    )(xcol1, w1s.astype(f32), shift1.astype(f32), w2s.astype(f32),
      shift2.astype(f32), perm, wih_t, b_gates, whh_ext, wcls_ext, bcls)
    return feat, logits


# --------------------------- pure-JAX reference -------------------------------
def reference_forward(x_nchw, p):
    def conv_bn_relu_ref(x, w, b, gamma, beta, rmean, rvar):
        y = jax.lax.conv_general_dilated(
            x, w, window_strides=(2, 1), padding=((1, 1), (0, 0)),
            dimension_numbers=("NCHW", "OIHW", "NCHW"))
        y = y + b.reshape(1, -1, 1, 1)
        y = (y - rmean.reshape(1, -1, 1, 1)) / jnp.sqrt(
            rvar.reshape(1, -1, 1, 1) + BN_EPS)
        y = y * gamma.reshape(1, -1, 1, 1) + beta.reshape(1, -1, 1, 1)
        return jnp.maximum(y, 0.0)

    x = conv_bn_relu_ref(x_nchw, p["conv1_w"], p["conv1_b"],
                         p["bn1_gamma"], p["bn1_beta"],
                         p["bn1_mean"], p["bn1_var"])
    x = conv_bn_relu_ref(x, p["conv2_w"], p["conv2_b"],
                         p["bn2_gamma"], p["bn2_beta"],
                         p["bn2_mean"], p["bn2_var"])
    x = jnp.transpose(x, (2, 0, 3, 1))                    # (T, B, W, C2)
    T, B = x.shape[0], x.shape[1]
    x = x.reshape(T, B, -1)
    nH = LSTM_UNITS
    h = jnp.zeros((B, nH), jnp.float32)
    c = jnp.zeros((B, nH), jnp.float32)
    for t in range(T):
        g = (x[t] @ p["lstm_w_ih"].T + p["lstm_b_ih"]
             + h @ p["lstm_w_hh"].T + p["lstm_b_hh"])
        i_g = jax.nn.sigmoid(g[:, 0 * nH:1 * nH])
        f_g = jax.nn.sigmoid(g[:, 1 * nH:2 * nH])
        g_g = jnp.tanh(g[:, 2 * nH:3 * nH])
        o_g = jax.nn.sigmoid(g[:, 3 * nH:4 * nH])
        c = f_g * c + i_g * g_g
        h = o_g * jnp.tanh(c)
    out = h @ p["cls_w"].T + p["cls_b"]
    return h, out


# ------------------------------ param init -----------------------------------
def init_params(key):
    c1, c2 = CONV_KERNELS, 2 * CONV_KERNELS
    d_in = WIDTH * c2
    ks = jax.random.split(key, 16)
    f = lambda k, shape, s=0.1: (s * jax.random.normal(k, shape)).astype(jnp.float32)
    return {
        "conv1_w": f(ks[0], (c1, IN_CH, KERNEL_SIZE, 1), 0.3),
        "conv1_b": f(ks[1], (c1,)),
        "bn1_gamma": 1.0 + f(ks[2], (c1,)),
        "bn1_beta": f(ks[3], (c1,)),
        "bn1_mean": f(ks[4], (c1,)),
        "bn1_var": 0.5 + jnp.abs(f(ks[5], (c1,), 0.5)),
        "conv2_w": f(ks[6], (c2, c1, KERNEL_SIZE, 1), 0.2),
        "conv2_b": f(ks[7], (c2,)),
        "bn2_gamma": 1.0 + f(ks[8], (c2,)),
        "bn2_beta": f(ks[9], (c2,)),
        "bn2_mean": f(ks[10], (c2,)),
        "bn2_var": 0.5 + jnp.abs(f(ks[11], (c2,), 0.5)),
        "lstm_w_ih": f(ks[12], (4 * LSTM_UNITS, d_in)),
        "lstm_w_hh": f(ks[13], (4 * LSTM_UNITS, LSTM_UNITS)),
        "lstm_b_ih": f(ks[14], (4 * LSTM_UNITS,)),
        "lstm_b_hh": f(ks[15], (4 * LSTM_UNITS,)),
        "cls_w": f(jax.random.fold_in(key, 100), (N_CLASSES, LSTM_UNITS), 0.2),
        "cls_b": f(jax.random.fold_in(key, 101), (N_CLASSES,)),
    }


if __name__ == "__main__":
    key = jax.random.PRNGKey(0)
    params = init_params(key)
    x = jax.random.normal(jax.random.fold_in(key, 7),
                          (BATCH, IN_CH, HEIGHT, WIDTH), jnp.float32)

    fwd = jax.jit(deep_conv_lstm_forward)
    feat, logits = fwd(x, params)
    feat = jax.block_until_ready(feat)
    logits = jax.block_until_ready(logits)

    feat_ref, logits_ref = reference_forward(x, params)
    np.testing.assert_allclose(np.asarray(feat), np.asarray(feat_ref),
                               rtol=2e-4, atol=2e-4)
    np.testing.assert_allclose(np.asarray(logits), np.asarray(logits_ref),
                               rtol=2e-4, atol=2e-4)

    assert feat.shape == (BATCH, LSTM_UNITS)
    assert logits.shape == (BATCH, N_CLASSES)
    print("KERNEL_OK")
</pallas_src>

<mosaic_0001>
module attributes {stable_mosaic.version = 11 : i64} {
  func.func @_fused_forward_kernel(%arg0: memref<128x4xf32, #tpu.memory_space<vmem>>, %arg1: memref<4x8xf32, #tpu.memory_space<vmem>>, %arg2: memref<1x8xf32, #tpu.memory_space<vmem>>, %arg3: memref<4x8x16xf32, #tpu.memory_space<vmem>>, %arg4: memref<1x16xf32, #tpu.memory_space<vmem>>, %arg5: memref<64x64xf32, #tpu.memory_space<vmem>>, %arg6: memref<128x128xf32, #tpu.memory_space<vmem>>, %arg7: memref<1x128xf32, #tpu.memory_space<vmem>>, %arg8: memref<128x128xf32, #tpu.memory_space<vmem>>, %arg9: memref<128x8xf32, #tpu.memory_space<vmem>>, %arg10: memref<1x8xf32, #tpu.memory_space<vmem>>, %arg11: memref<2x32xf32, #tpu.memory_space<vmem>>, %arg12: memref<2x8xf32, #tpu.memory_space<vmem>>) attributes {dimension_semantics = [], scalar_prefetch = 0 : i64, scratch_operands = 0 : i64, tpu.core_type = #tpu.core_type<tc>} {
    %c0 = arith.constant 0 : index
    %c0_0 = arith.constant 0 : index
    %0 = vector.load %arg0[%c0, %c0_0] : memref<128x4xf32, #tpu.memory_space<vmem>>, vector<128x4xf32>
    %c0_1 = arith.constant 0 : index
    %c0_2 = arith.constant 0 : index
    %1 = vector.load %arg1[%c0_1, %c0_2] : memref<4x8xf32, #tpu.memory_space<vmem>>, vector<4x8xf32>
    %cst = arith.constant dense<0.000000e+00> : vector<128x8xf32>
    %2 = tpu.matmul %0, %1, %cst {dimension_numbers = #tpu.dot_dimension_numbers<[1], [0], [0], [1], [0, 0, 1, 1], [], []>} : vector<128x4xf32>, vector<4x8xf32>, vector<128x8xf32> -> vector<128x8xf32>
    %c0_3 = arith.constant 0 : index
    %c0_4 = arith.constant 0 : index
    %3 = vector.load %arg2[%c0_3, %c0_4] : memref<1x8xf32, #tpu.memory_space<vmem>>, vector<1x8xf32>
    %4 = vector.broadcast %3 : vector<1x8xf32> to vector<128x8xf32>
    %5 = arith.addf %2, %4 : vector<128x8xf32>
    %cst_5 = arith.constant 0.000000e+00 : f32
    %6 = vector.broadcast %cst_5 : f32 to vector<128x8xf32>
    %7 = arith.maximumf %5, %6 : vector<128x8xf32>
    %cst_6 = arith.constant 0.000000e+00 : f32
    %8 = vector.broadcast %cst_6 : f32 to vector<16x8xf32>
    %9 = vector.extract_strided_slice %7 {offsets = [64, 0], sizes = [48, 8], strides = [1, 1]} : vector<128x8xf32> to vector<48x8xf32>
    %10 = tpu.concatenate %8, %9 in 0 : vector<16x8xf32>, vector<48x8xf32> -> vector<64x8xf32>
    %11 = vector.extract_strided_slice %7 {offsets = [0, 0], sizes = [64, 8], strides = [1, 1]} : vector<128x8xf32> to vector<64x8xf32>
    %12 = vector.extract_strided_slice %7 {offsets = [64, 0], sizes = [64, 8], strides = [1, 1]} : vector<128x8xf32> to vector<64x8xf32>
    %13 = vector.extract_strided_slice %7 {offsets = [16, 0], sizes = [48, 8], strides = [1, 1]} : vector<128x8xf32> to vector<48x8xf32>
    %14 = tpu.concatenate %13, %8 in 0 : vector<48x8xf32>, vector<16x8xf32> -> vector<64x8xf32>
    %c0_7 = arith.constant 0 : index
    %c0_8 = arith.constant 0 : index
    %c0_9 = arith.constant 0 : index
    %15 = vector.load %arg3[%c0_7, %c0_8, %c0_9] : memref<4x8x16xf32, #tpu.memory_space<vmem>>, vector<1x8x16xf32>
    %16 = vector.shape_cast %15 : vector<1x8x16xf32> to vector<8x16xf32>
    %cst_10 = arith.constant dense<0.000000e+00> : vector<64x16xf32>
    %17 = tpu.matmul %10, %16, %cst_10 {dimension_numbers = #tpu.dot_dimension_numbers<[1], [0], [0], [1], [0, 0, 1, 1], [], []>} : vector<64x8xf32>, vector<8x16xf32>, vector<64x16xf32> -> vector<64x16xf32>
    %c1 = arith.constant 1 : index
    %c0_11 = arith.constant 0 : index
    %c0_12 = arith.constant 0 : index
    %18 = vector.load %arg3[%c1, %c0_11, %c0_12] : memref<4x8x16xf32, #tpu.memory_space<vmem>>, vector<1x8x16xf32>
    %19 = vector.shape_cast %18 : vector<1x8x16xf32> to vector<8x16xf32>
    %cst_13 = arith.constant dense<0.000000e+00> : vector<64x16xf32>
    %20 = tpu.matmul %11, %19, %cst_13 {dimension_numbers = #tpu.dot_dimension_numbers<[1], [0], [0], [1], [0, 0, 1, 1], [], []>} : vector<64x8xf32>, vector<8x16xf32>, vector<64x16xf32> -> vector<64x16xf32>
    %21 = arith.addf %17, %20 : vector<64x16xf32>
    %c2 = arith.constant 2 : index
    %c0_14 = arith.constant 0 : index
    %c0_15 = arith.constant 0 : index
    %22 = vector.load %arg3[%c2, %c0_14, %c0_15] : memref<4x8x16xf32, #tpu.memory_space<vmem>>, vector<1x8x16xf32>
    %23 = vector.shape_cast %22 : vector<1x8x16xf32> to vector<8x16xf32>
    %cst_16 = arith.constant dense<0.000000e+00> : vector<64x16xf32>
    %24 = tpu.matmul %12, %23, %cst_16 {dimension_numbers = #tpu.dot_dimension_numbers<[1], [0], [0], [1], [0, 0, 1, 1], [], []>} : vector<64x8xf32>, vector<8x16xf32>, vector<64x16xf32> -> vector<64x16xf32>
    %25 = arith.addf %21, %24 : vector<64x16xf32>
    %c3 = arith.constant 3 : index
    %c0_17 = arith.constant 0 : index
    %c0_18 = arith.constant 0 : index
    %26 = vector.load %arg3[%c3, %c0_17, %c0_18] : memref<4x8x16xf32, #tpu.memory_space<vmem>>, vector<1x8x16xf32>
    %27 = vector.shape_cast %26 : vector<1x8x16xf32> to vector<8x16xf32>
    %cst_19 = arith.constant dense<0.000000e+00> : vector<64x16xf32>
    %28 = tpu.matmul %14, %27, %cst_19 {dimension_numbers = #tpu.dot_dimension_numbers<[1], [0], [0], [1], [0, 0, 1, 1], [], []>} : vector<64x8xf32>, vector<8x16xf32>, vector<64x16xf32> -> vector<64x16xf32>
    %29 = arith.addf %25, %28 : vector<64x16xf32>
    %c0_20 = arith.constant 0 : index
    %c0_21 = arith.constant 0 : index
    %30 = vector.load %arg4[%c0_20, %c0_21] : memref<1x16xf32, #tpu.memory_space<vmem>>, vector<1x16xf32>
    %31 = vector.broadcast %30 : vector<1x16xf32> to vector<64x16xf32>
    %32 = arith.addf %29, %31 : vector<64x16xf32>
    %cst_22 = arith.constant 0.000000e+00 : f32
    %33 = vector.broadcast %cst_22 : f32 to vector<64x16xf32>
    %34 = arith.maximumf %32, %33 : vector<64x16xf32>
    %c0_23 = arith.constant 0 : index
    %c0_24 = arith.constant 0 : index
    %35 = vector.load %arg5[%c0_23, %c0_24] : memref<64x64xf32, #tpu.memory_space<vmem>>, vector<64x64xf32>
    %cst_25 = arith.constant dense<0.000000e+00> : vector<64x16xf32>
    %36 = tpu.matmul %35, %34, %cst_25 {dimension_numbers = #tpu.dot_dimension_numbers<[1], [0], [0], [1], [0, 0, 1, 1], [], []>} : vector<64x64xf32>, vector<64x16xf32>, vector<64x16xf32> -> vector<64x16xf32>
    %c0_26 = arith.constant 0 : index
    %c0_27 = arith.constant 0 : index
    %37 = vector.load %arg6[%c0_26, %c0_27] : memref<128x128xf32, #tpu.memory_space<vmem>>, vector<128x128xf32>
    %cst_28 = arith.constant 0.000000e+00 : f32
    %38 = vector.broadcast %cst_28 : f32 to vector<8x128xf32>
    %39 = vector.extract_strided_slice %36 {offsets = [0, 0], sizes = [8, 16], strides = [1, 1]} : vector<64x16xf32> to vector<8x16xf32>
    %40 = vector.extract_strided_slice %37 {offsets = [0, 0], sizes = [16, 128], strides = [1, 1]} : vector<128x128xf32> to vector<16x128xf32>
    %cst_29 = arith.constant dense<0.000000e+00> : vector<8x128xf32>
    %41 = tpu.matmul %39, %40, %cst_29 {dimension_numbers = #tpu.dot_dimension_numbers<[1], [0], [0], [1], [0, 0, 1, 1], [], []>} : vector<8x16xf32>, vector<16x128xf32>, vector<8x128xf32> -> vector<8x128xf32>
    %42 = arith.addf %38, %41 : vector<8x128xf32>
    %43 = vector.extract_strided_slice %36 {offsets = [8, 0], sizes = [8, 16], strides = [1, 1]} : vector<64x16xf32> to vector<8x16xf32>
    %44 = vector.extract_strided_slice %37 {offsets = [16, 0], sizes = [16, 128], strides = [1, 1]} : vector<128x128xf32> to vector<16x128xf32>
    %cst_30 = arith.constant dense<0.000000e+00> : vector<8x128xf32>
    %45 = tpu.matmul %43, %44, %cst_30 {dimension_numbers = #tpu.dot_dimension_numbers<[1], [0], [0], [1], [0, 0, 1, 1], [], []>} : vector<8x16xf32>, vector<16x128xf32>, vector<8x128xf32> -> vector<8x128xf32>
    %46 = arith.addf %42, %45 : vector<8x128xf32>
    %47 = vector.extract_strided_slice %36 {offsets = [16, 0], sizes = [8, 16], strides = [1, 1]} : vector<64x16xf32> to vector<8x16xf32>
    %48 = vector.extract_strided_slice %37 {offsets = [32, 0], sizes = [16, 128], strides = [1, 1]} : vector<128x128xf32> to vector<16x128xf32>
    %cst_31 = arith.constant dense<0.000000e+00> : vector<8x128xf32>
    %49 = tpu.matmul %47, %48, %cst_31 {dimension_numbers = #tpu.dot_dimension_numbers<[1], [0], [0], [1], [0, 0, 1, 1], [], []>} : vector<8x16xf32>, vector<16x128xf32>, vector<8x128xf32> -> vector<8x128xf32>
    %50 = arith.addf %46, %49 : vector<8x128xf32>
    %51 = vector.extract_strided_slice %36 {offsets = [24, 0], sizes = [8, 16], strides = [1, 1]} : vector<64x16xf32> to vector<8x16xf32>
    %52 = vector.extract_strided_slice %37 {offsets = [48, 0], sizes = [16, 128], strides = [1, 1]} : vector<128x128xf32> to vector<16x128xf32>
    %cst_32 = arith.constant dense<0.000000e+00> : vector<8x128xf32>
    %53 = tpu.matmul %51, %52, %cst_32 {dimension_numbers = #tpu.dot_dimension_numbers<[1], [0], [0], [1], [0, 0, 1, 1], [], []>} : vector<8x16xf32>, vector<16x128xf32>, vector<8x128xf32> -> vector<8x128xf32>
    %54 = arith.addf %50, %53 : vector<8x128xf32>
    %55 = vector.extract_strided_slice %36 {offsets = [32, 0], sizes = [8, 16], strides = [1, 1]} : vector<64x16xf32> to vector<8x16xf32>
    %56 = vector.extract_strided_slice %37 {offsets = [64, 0], sizes = [16, 128], strides = [1, 1]} : vector<128x128xf32> to vector<16x128xf32>
    %cst_33 = arith.constant dense<0.000000e+00> : vector<8x128xf32>
    %57 = tpu.matmul %55, %56, %cst_33 {dimension_numbers = #tpu.dot_dimension_numbers<[1], [0], [0], [1], [0, 0, 1, 1], [], []>} : vector<8x16xf32>, vector<16x128xf32>, vector<8x128xf32> -> vector<8x128xf32>
    %58 = arith.addf %54, %57 : vector<8x128xf32>
    %59 = vector.extract_strided_slice %36 {offsets = [40, 0], sizes = [8, 16], strides = [1, 1]} : vector<64x16xf32> to vector<8x16xf32>
    %60 = vector.extract_strided_slice %37 {offsets = [80, 0], sizes = [16, 128], strides = [1, 1]} : vector<128x128xf32> to vector<16x128xf32>
    %cst_34 = arith.constant dense<0.000000e+00> : vector<8x128xf32>
    %61 = tpu.matmul %59, %60, %cst_34 {dimension_numbers = #tpu.dot_dimension_numbers<[1], [0], [0], [1], [0, 0, 1, 1], [], []>} : vector<8x16xf32>, vector<16x128xf32>, vector<8x128xf32> -> vector<8x128xf32>
    %62 = arith.addf %58, %61 : vector<8x128xf32>
    %63 = vector.extract_strided_slice %36 {offsets = [48, 0], sizes = [8, 16], strides = [1, 1]} : vector<64x16xf32> to vector<8x16xf32>
    %64 = vector.extract_strided_slice %37 {offsets = [96, 0], sizes = [16, 128], strides = [1, 1]} : vector<128x128xf32> to vector<16x128xf32>
    %cst_35 = arith.constant dense<0.000000e+00> : vector<8x128xf32>
    %65 = tpu.matmul %63, %64, %cst_35 {dimension_numbers = #tpu.dot_dimension_numbers<[1], [0], [0], [1], [0, 0, 1, 1], [], []>} : vector<8x16xf32>, vector<16x128xf32>, vector<8x128xf32> -> vector<8x128xf32>
    %66 = arith.addf %62, %65 : vector<8x128xf32>
    %67 = vector.extract_strided_slice %36 {offsets = [56, 0], sizes = [8, 16], strides = [1, 1]} : vector<64x16xf32> to vector<8x16xf32>
    %68 = vector.extract_strided_slice %37 {offsets = [112, 0], sizes = [16, 128], strides = [1, 1]} : vector<128x128xf32> to vector<16x128xf32>
    %cst_36 = arith.constant dense<0.000000e+00> : vector<8x128xf32>
    %69 = tpu.matmul %67, %68, %cst_36 {dimension_numbers = #tpu.dot_dimension_numbers<[1], [0], [0], [1], [0, 0, 1, 1], [], []>} : vector<8x16xf32>, vector<16x128xf32>, vector<8x128xf32> -> vector<8x128xf32>
    %70 = arith.addf %66, %69 : vector<8x128xf32>
    %c0_37 = arith.constant 0 : index
    %c0_38 = arith.constant 0 : index
    %71 = vector.load %arg7[%c0_37, %c0_38] : memref<1x128xf32, #tpu.memory_space<vmem>>, vector<1x128xf32>
    %72 = vector.broadcast %71 : vector<1x128xf32> to vector<8x128xf32>
    %73 = arith.addf %70, %72 : vector<8x128xf32>
    %74 = tpu.iota {dimensions = array<i32: 1>} : vector<2x128xi32>
    %c96_i32 = arith.constant 96 : i32
    %75 = vector.broadcast %c96_i32 : i32 to vector<2x128xi32>
    %76 = arith.cmpi sge, %74, %75 : vector<2x128xi32>
    %c64_i32 = arith.constant 64 : i32
    %77 = vector.broadcast %c64_i32 : i32 to vector<2x128xi32>
    %78 = arith.cmpi sge, %74, %77 : vector<2x128xi32>
    %c96_i32_39 = arith.constant 96 : i32
    %79 = vector.broadcast %c96_i32_39 : i32 to vector<2x128xi32>
    %80 = arith.cmpi slt, %74, %79 : vector<2x128xi32>
    %81 = arith.andi %78, %80 : vector<2x128xi1>
    %c64_i32_40 = arith.constant 64 : i32
    %82 = vector.broadcast %c64_i32_40 : i32 to vector<2x128xi32>
    %83 = arith.cmpi slt, %74, %82 : vector<2x128xi32>
    %c0_41 = arith.constant 0 : index
    %c0_42 = arith.constant 0 : index
    %84 = vector.load %arg8[%c0_41, %c0_42] : memref<128x128xf32, #tpu.memory_space<vmem>>, vector<128x128xf32>
    %cst_43 = arith.constant 0.000000e+00 : f32
    %85 = vector.broadcast %cst_43 : f32 to vector<2x128xf32>
    %cst_44 = arith.constant 0.000000e+00 : f32
    %86 = vector.broadcast %cst_44 : f32 to vector<2x128xf32>
    %87 = vector.extract_strided_slice %73 {offsets = [0, 0], sizes = [2, 128], strides = [1, 1]} : vector<8x128xf32> to vector<2x128xf32>
    %cst_45 = arith.constant dense<0.000000e+00> : vector<2x128xf32>
    %88 = tpu.matmul %85, %84, %cst_45 {dimension_numbers = #tpu.dot_dimension_numbers<[1], [0], [0], [1], [0, 0, 1, 1], [], []>} : vector<2x128xf32>, vector<128x128xf32>, vector<2x128xf32> -> vector<2x128xf32>
    %89 = arith.addf %87, %88 : vector<2x128xf32>
    %90 = math.tanh %89 : vector<2x128xf32>
    %91 = arith.negf %89 : vector<2x128xf32>
    %92 = math.exp %91 : vector<2x128xf32>
    %cst_46 = arith.constant 1.000000e+00 : f32
    %93 = vector.broadcast %cst_46 : f32 to vector<2x128xf32>
    %94 = arith.addf %93, %92 : vector<2x128xf32>
    %95 = arith.divf %93, %94 : vector<2x128xf32>
    %96 = arith.select %76, %90, %95 : vector<2x128xi1>, vector<2x128xf32>
    %c64_i32_47 = arith.constant 64 : i32
    %97 = tpu.dynamic_rotate %96 by %c64_i32_47 dim 1 : vector<2x128xf32>, i32 -> vector<2x128xf32>
    %98 = arith.mulf %96, %97 : vector<2x128xf32>
    %c32_i32 = arith.constant 32 : i32
    %99 = tpu.dynamic_rotate %98 by %c32_i32 dim 1 : vector<2x128xf32>, i32 -> vector<2x128xf32>
    %100 = arith.mulf %96, %86 : vector<2x128xf32>
    %101 = arith.addf %100, %99 : vector<2x128xf32>
    %c64_i32_48 = arith.constant 64 : i32
    %102 = tpu.dynamic_rotate %101 by %c64_i32_48 dim 1 : vector<2x128xf32>, i32 -> vector<2x128xf32>
    %103 = arith.select %83, %101, %102 : vector<2x128xi1>, vector<2x128xf32>
    %104 = math.tanh %103 : vector<2x128xf32>
    %105 = arith.mulf %96, %104 : vector<2x128xf32>
    %cst_49 = arith.constant 0.000000e+00 : f32
    %106 = vector.broadcast %cst_49 : f32 to vector<2x128xf32>
    %107 = arith.select %81, %105, %106 : vector<2x128xi1>, vector<2x128xf32>
    %108 = vector.extract_strided_slice %73 {offsets = [2, 0], sizes = [2, 128], strides = [1, 1]} : vector<8x128xf32> to vector<2x128xf32>
    %cst_50 = arith.constant dense<0.000000e+00> : vector<2x128xf32>
    %109 = tpu.matmul %107, %84, %cst_50 {dimension_numbers = #tpu.dot_dimension_numbers<[1], [0], [0], [1], [0, 0, 1, 1], [], []>} : vector<2x128xf32>, vector<128x128xf32>, vector<2x128xf32> -> vector<2x128xf32>
    %110 = arith.addf %108, %109 : vector<2x128xf32>
    %111 = math.tanh %110 : vector<2x128xf32>
    %112 = arith.negf %110 : vector<2x128xf32>
    %113 = math.exp %112 : vector<2x128xf32>
    %cst_51 = arith.constant 1.000000e+00 : f32
    %114 = vector.broadcast %cst_51 : f32 to vector<2x128xf32>
    %115 = arith.addf %114, %113 : vector<2x128xf32>
    %116 = arith.divf %114, %115 : vector<2x128xf32>
    %117 = arith.select %76, %111, %116 : vector<2x128xi1>, vector<2x128xf32>
    %c64_i32_52 = arith.constant 64 : i32
    %118 = tpu.dynamic_rotate %117 by %c64_i32_52 dim 1 : vector<2x128xf32>, i32 -> vector<2x128xf32>
    %119 = arith.mulf %117, %118 : vector<2x128xf32>
    %c32_i32_53 = arith.constant 32 : i32
    %120 = tpu.dynamic_rotate %119 by %c32_i32_53 dim 1 : vector<2x128xf32>, i32 -> vector<2x128xf32>
    %121 = arith.mulf %117, %103 : vector<2x128xf32>
    %122 = arith.addf %121, %120 : vector<2x128xf32>
    %c64_i32_54 = arith.constant 64 : i32
    %123 = tpu.dynamic_rotate %122 by %c64_i32_54 dim 1 : vector<2x128xf32>, i32 -> vector<2x128xf32>
    %124 = arith.select %83, %122, %123 : vector<2x128xi1>, vector<2x128xf32>
    %125 = math.tanh %124 : vector<2x128xf32>
    %126 = arith.mulf %117, %125 : vector<2x128xf32>
    %cst_55 = arith.constant 0.000000e+00 : f32
    %127 = vector.broadcast %cst_55 : f32 to vector<2x128xf32>
    %128 = arith.select %81, %126, %127 : vector<2x128xi1>, vector<2x128xf32>
    %129 = vector.extract_strided_slice %73 {offsets = [4, 0], sizes = [2, 128], strides = [1, 1]} : vector<8x128xf32> to vector<2x128xf32>
    %cst_56 = arith.constant dense<0.000000e+00> : vector<2x128xf32>
    %130 = tpu.matmul %128, %84, %cst_56 {dimension_numbers = #tpu.dot_dimension_numbers<[1], [0], [0], [1], [0, 0, 1, 1], [], []>} : vector<2x128xf32>, vector<128x128xf32>, vector<2x128xf32> -> vector<2x128xf32>
    %131 = arith.addf %129, %130 : vector<2x128xf32>
    %132 = math.tanh %131 : vector<2x128xf32>
    %133 = arith.negf %131 : vector<2x128xf32>
    %134 = math.exp %133 : vector<2x128xf32>
    %cst_57 = arith.constant 1.000000e+00 : f32
    %135 = vector.broadcast %cst_57 : f32 to vector<2x128xf32>
    %136 = arith.addf %135, %134 : vector<2x128xf32>
    %137 = arith.divf %135, %136 : vector<2x128xf32>
    %138 = arith.select %76, %132, %137 : vector<2x128xi1>, vector<2x128xf32>
    %c64_i32_58 = arith.constant 64 : i32
    %139 = tpu.dynamic_rotate %138 by %c64_i32_58 dim 1 : vector<2x128xf32>, i32 -> vector<2x128xf32>
    %140 = arith.mulf %138, %139 : vector<2x128xf32>
    %c32_i32_59 = arith.constant 32 : i32
    %141 = tpu.dynamic_rotate %140 by %c32_i32_59 dim 1 : vector<2x128xf32>, i32 -> vector<2x128xf32>
    %142 = arith.mulf %138, %124 : vector<2x128xf32>
    %143 = arith.addf %142, %141 : vector<2x128xf32>
    %c64_i32_60 = arith.constant 64 : i32
    %144 = tpu.dynamic_rotate %143 by %c64_i32_60 dim 1 : vector<2x128xf32>, i32 -> vector<2x128xf32>
    %145 = arith.select %83, %143, %144 : vector<2x128xi1>, vector<2x128xf32>
    %146 = math.tanh %145 : vector<2x128xf32>
    %147 = arith.mulf %138, %146 : vector<2x128xf32>
    %cst_61 = arith.constant 0.000000e+00 : f32
    %148 = vector.broadcast %cst_61 : f32 to vector<2x128xf32>
    %149 = arith.select %81, %147, %148 : vector<2x128xi1>, vector<2x128xf32>
    %150 = vector.extract_strided_slice %73 {offsets = [6, 0], sizes = [2, 128], strides = [1, 1]} : vector<8x128xf32> to vector<2x128xf32>
    %cst_62 = arith.constant dense<0.000000e+00> : vector<2x128xf32>
    %151 = tpu.matmul %149, %84, %cst_62 {dimension_numbers = #tpu.dot_dimension_numbers<[1], [0], [0], [1], [0, 0, 1, 1], [], []>} : vector<2x128xf32>, vector<128x128xf32>, vector<2x128xf32> -> vector<2x128xf32>
    %152 = arith.addf %150, %151 : vector<2x128xf32>
    %153 = math.tanh %152 : vector<2x128xf32>
    %154 = arith.negf %152 : vector<2x128xf32>
    %155 = math.exp %154 : vector<2x128xf32>
    %cst_63 = arith.constant 1.000000e+00 : f32
    %156 = vector.broadcast %cst_63 : f32 to vector<2x128xf32>
    %157 = arith.addf %156, %155 : vector<2x128xf32>
    %158 = arith.divf %156, %157 : vector<2x128xf32>
    %159 = arith.select %76, %153, %158 : vector<2x128xi1>, vector<2x128xf32>
    %c64_i32_64 = arith.constant 64 : i32
    %160 = tpu.dynamic_rotate %159 by %c64_i32_64 dim 1 : vector<2x128xf32>, i32 -> vector<2x128xf32>
    %161 = arith.mulf %159, %160 : vector<2x128xf32>
    %c32_i32_65 = arith.constant 32 : i32
    %162 = tpu.dynamic_rotate %161 by %c32_i32_65 dim 1 : vector<2x128xf32>, i32 -> vector<2x128xf32>
    %163 = arith.mulf %159, %145 : vector<2x128xf32>
    %164 = arith.addf %163, %162 : vector<2x128xf32>
    %c64_i32_66 = arith.constant 64 : i32
    %165 = tpu.dynamic_rotate %164 by %c64_i32_66 dim 1 : vector<2x128xf32>, i32 -> vector<2x128xf32>
    %166 = arith.select %83, %164, %165 : vector<2x128xi1>, vector<2x128xf32>
    %167 = math.tanh %166 : vector<2x128xf32>
    %168 = arith.mulf %159, %167 : vector<2x128xf32>
    %cst_67 = arith.constant 0.000000e+00 : f32
    %169 = vector.broadcast %cst_67 : f32 to vector<2x128xf32>
    %170 = arith.select %81, %168, %169 : vector<2x128xi1>, vector<2x128xf32>
    %171 = vector.extract_strided_slice %170 {offsets = [0, 64], sizes = [2, 32], strides = [1, 1]} : vector<2x128xf32> to vector<2x32xf32>
    %c0_68 = arith.constant 0 : index
    %c0_69 = arith.constant 0 : index
    %172 = vector.load %arg11[%c0_68, %c0_69] : memref<2x32xf32, #tpu.memory_space<vmem>>, vector<2x32xf32>
    tpu.vector_store %arg11[%c0_68, %c0_69], %171 {strides = array<i32>} : memref<2x32xf32, #tpu.memory_space<vmem>>, vector<2x32xf32>,
    %c0_70 = arith.constant 0 : index
    %c0_71 = arith.constant 0 : index
    %173 = vector.load %arg9[%c0_70, %c0_71] : memref<128x8xf32, #tpu.memory_space<vmem>>, vector<128x8xf32>
    %cst_72 = arith.constant dense<0.000000e+00> : vector<2x8xf32>
    %174 = tpu.matmul %170, %173, %cst_72 {dimension_numbers = #tpu.dot_dimension_numbers<[1], [0], [0], [1], [0, 0, 1, 1], [], []>} : vector<2x128xf32>, vector<128x8xf32>, vector<2x8xf32> -> vector<2x8xf32>
    %c0_73 = arith.constant 0 : index
    %c0_74 = arith.constant 0 : index
    %175 = vector.load %arg10[%c0_73, %c0_74] : memref<1x8xf32, #tpu.memory_space<vmem>>, vector<1x8xf32>
    %176 = vector.broadcast %175 : vector<1x8xf32> to vector<2x8xf32>
    %177 = arith.addf %174, %176 : vector<2x8xf32>
    %c0_75 = arith.constant 0 : index
    %c0_76 = arith.constant 0 : index
    %178 = vector.load %arg12[%c0_75, %c0_76] : memref<2x8xf32, #tpu.memory_space<vmem>>, vector<2x8xf32>
    tpu.vector_store %arg12[%c0_75, %c0_76], %177 {strides = array<i32>} : memref<2x8xf32, #tpu.memory_space<vmem>>, vector<2x8xf32>,
    return
  }
}

</mosaic_0001>

<bundles_post_ra>
// kernel: deep_conv_lstm_forward.1
= control target key start
LH: loop header
LB: loop body
LE: loop exit
PB: predicated region body
PF: predicated region fallthrough
CT: control target
= control target key end

     0   :  { %18 = vsyncpa [#allocation3], 0  ;;  %vm115_vm0 = vcmask 1043456   ;;  %vm66_vm1 = vcmask 31744   ;;  %s3502_s0 = inlined_call_operand.vmem [shape: f32[128,4], index: 0, kind: input, shape index: {}]   ;;  %s3503_s1 = inlined_call_operand.vmem [shape: f32[4,8], index: 1, kind: input, shape index: {}]   ;;  %s3504_s2 = inlined_call_operand.vmem [shape: f32[1,8], index: 2, kind: input, shape index: {}]   ;;  %s3505_s3 = inlined_call_operand.vmem [shape: f32[4,8,16], index: 3, kind: input, shape index: {}]   ;;  %s3506_s4 = inlined_call_operand.vmem [shape: f32[1,16], index: 4, kind: input, shape index: {}]   ;;  %s3507_s5 = inlined_call_operand.vmem [shape: f32[64,64], index: 5, kind: input, shape index: {}]   ;;  %s3508_s6 = inlined_call_operand.vmem [shape: f32[128,128], index: 6, kind: input, shape index: {}]   ;;  %s3509_s7 = inlined_call_operand.vmem [shape: f32[1,128], index: 7, kind: input, shape index: {}]   ;;  %s3510_s8 = inlined_call_operand.vmem [shape: f32[128,128], index: 8, kind: input, shape index: {}]   ;;  %s3511_s9 = inlined_call_operand.vmem [shape: f32[128,8], index: 9, kind: input, shape index: {}]   ;;  %s3512_s10 = inlined_call_operand.vmem [shape: f32[1,8], index: 10, kind: input, shape index: {}]   ;;  %s3513_s11 = inlined_call_operand.hbm [shape: f32[2,32], index: 11, kind: output, shape index: {0}]   ;;  %s3514_s12 = inlined_call_operand.hbm [shape: f32[2,8], index: 12, kind: output, shape index: {1}]  }
   0x1   :  { %v58_v0 = vld [vmem:[%s3503_s1] sm:$0xf]  ;;  %v43_v2 = vld [vmem:[%s3502_s0 + $0x8] sm:$0xff]  ;;  %v44_v3 = vld [vmem:[%s3502_s0 + $0x10] sm:$0xff] }
   0x2   :  { %v42_v1 = vld [vmem:[%s3502_s0] sm:$0xff]  ;;  %2402 = vmatprep.subr.msk.mxu0 %vm115_vm0, %v58_v0  ;;  %2743 = vmatprep.subr.msk.mxu1 %vm115_vm0, %v58_v0  ;;  %v51_v5 = vld [vmem:[%s3502_s0 + $0x48] sm:$0xff]  ;;  %v52_v6 = vld [vmem:[%s3502_s0 + $0x50] sm:$0xff] }
   0x3   :  { %2404 = vmatprep.mubr.msk.f32.mxu0 %vm66_vm1, %v42_v1  ;;  %2403 = vmatpush3.msk.msra.mxu0 %vm115_vm0, %v58_v0  ;;  %v50_v4 = vld [vmem:[%s3502_s0 + $0x40] sm:$0xff]  ;;  %v45_v7 = vld [vmem:[%s3502_s0 + $0x18] sm:$0xff]  ;;  %v2169_v9 = vld [vmem:[%s3505_s3 + $0x8] sm:$0xff] }
   0x4   :  { %2405 = vmatmul.mubr.msk.f32.vlgmr.msra.gmra.mxu0 %vm66_vm1, %v43_v2  ;;  %2744 = vmatpush3.msk.msra.mxu1 %vm115_vm0, %v58_v0  ;;  %v46_v8 = vld [vmem:[%s3502_s0 + $0x20] sm:$0xff]  ;;  %v53_v10 = vld [vmem:[%s3502_s0 + $0x58] sm:$0xff] }
   0x5   :  { %2407 = vmatprep.mubr.msk.f32.mxu0 %vm66_vm1, %v44_v3  ;;  %2416 = vmatprep.mubr.msk.f32.mxu1 %vm66_vm1, %v50_v4 }
   0x6   :  { %2417 = vmatmul.mubr.msk.f32.vlgmr.msra.gmra.mxu1 %vm66_vm1, %v51_v5  ;;  %2428 = vmatprep.subr.mxu1 %v2169_v9 }
   0x7   :  { %2419 = vmatprep.mubr.msk.f32.mxu1 %vm66_vm1, %v52_v6 }
   0x8   :  { %19 = vsyncpa [#allocation5], 0  ;;  %2408 = vmatmul.mubr.msk.f32.gmra.mxu0 %vm66_vm1, %v45_v7  ;;  %v54_v11 = vld [vmem:[%s3502_s0 + $0x60] sm:$0xff]  ;;  %2429 = vmatpush3.msra.mxu1 %v2169_v9  ;;  %v47_v12 = vld [vmem:[%s3502_s0 + $0x28] sm:$0xff]  ;;  %vm283_vm2 = vcmask 64512   ;;  %v2827_v6 = vmov 0.0  }
   0x9   :  { %2410 = vmatprep.mubr.msk.f32.mxu0 %vm66_vm1, %v46_v8  ;;  %v48_v13 = vld [vmem:[%s3502_s0 + $0x30] sm:$0xff]  ;;  %v55_v14 = vld [vmem:[%s3502_s0 + $0x68] sm:$0xff]  ;;  %v49_v16 = vld [vmem:[%s3502_s0 + $0x38] sm:$0xff]  ;;  %vm806_vm3 = vcmask 523264   ;;  %vm2828_vm4 = vmmov 0   ;;  %vm952_vm5 = vcmask 130048  }
   0xa   :  { %2420 = vmatmul.mubr.msk.f32.gmra.mxu1 %vm66_vm1, %v53_v10  ;;  %v56_v15 = vld [vmem:[%s3502_s0 + $0x70] sm:$0xff]  ;;  %v57_v17 = vld [vmem:[%s3502_s0 + $0x78] sm:$0xff]  ;;  %v280_v18 = vld [vmem:[%s3505_s3] sm:$0xff]  ;;  %s2831_s20 = smov [#allocation2]   ;;  %vm2024_vm11 = vcmask 261126  }
   0xb   :  { %2422 = vmatprep.mubr.msk.f32.mxu1 %vm66_vm1, %v54_v11  ;;  %2442 = vmatprep.subr.mxu1 %v280_v18  ;;  %v2184_v19 = vld [vmem:[%s3505_s3 + $0x10] sm:$0xff]  ;;  %v2151_v20 = vld [vmem:[%s3504_s2] ss:$0 sm:$0xff]  ;;  %v2193_v39 = vld [vmem:[%s3505_s3 + $0x18] sm:$0xff]  ;;  %s2129_s21 = sshll.u32 %s2831_s20, 4  ;;  %s2130_s21 = int_to_ptr.vmem [resolvable:$true] %s2129_s21 }
   0xc   :  { %2411 = vmatmul.mubr.msk.f32.gmra.mxu0 %vm66_vm1, %v47_v12  ;;  %2456 = vmatprep.subr.mxu0 %v2184_v19  ;;  %v798_v7 = vld [vmem:[%s3507_s5] sm:$0xff]  ;;  %v939_v8 = vld [vmem:[%s3508_s6 + $0x18] sm:$0xff]  ;;  %p2788_p1 = scmp.lt.s32.totalorder %s2130_s21, %s2130_s21 }
   0xd   :  { %2413 = vmatprep.mubr.msk.f32.mxu0 %vm66_vm1, %v48_v13  ;;  %2457 = vmatpush3.msra.mxu0 %v2184_v19 }
   0xe   :  { %2423 = vmatmul.mubr.msk.f32.gmra.mxu1 %vm66_vm1, %v55_v14 }
   0xf   :  { %2425 = vmatprep.mubr.msk.f32.mxu1 %vm66_vm1, %v56_v15 }
  0x10   :  { %2414 = vmatmul.mubr.msk.f32.gmra.mxu0 %vm66_vm1, %v49_v16 }
  0x12   :  { %2426 = vmatmul.mubr.msk.f32.gmra.mxu1 %vm66_vm1, %v57_v17 }
  0xc4   :  { %v2406_v21 = vpop.f32.mrf.mxu0 }
  0xc5   :  { %v191_v22 = vadd.f32 %v2406_v21, %v2151_v20 }
  0xc6   :  { %v185_v23 = vpop.f32.mrf.mxu0  ;;  %v2418_v24 = vpop.f32.mrf.mxu1 }
  0xc7   :  { %v186_v25 = vadd.f32 %v2151_v20, %v185_v23  ;;  %v2977_v26 = vadd.f32 %v2418_v24, %v2151_v20  ;;  %v265_v31 = vmax.f32 %v191_v22, 0.0 }
  0xc8   :  { %v2409_v27 = vpop.f32.mrf.mxu0  ;;  %v225_v28 = vpop.f32.mrf.mxu1 }
  0xc9   :  { %v264_v29 = vmax.f32 %v186_v25, 0.0  ;;  %v226_v30 = vadd.f32 %v2151_v20, %v225_v28  ;;  %v2979_v32 = vadd.f32 %v2409_v27, %v2151_v20  ;;  %v273_v34 = vmax.f32 %v2977_v26, 0.0 }
  0xca   :  { %v195_v33 = vpop.f32.mrf.mxu0  ;;  %v2421_v35 = vpop.f32.mrf.mxu1 }
  0xcb   :  { %v2982_v36 = vadd.f32 %v2151_v20, %v195_v33  ;;  %2430 = vmatprep.mubr.msk.f32.mxu1 %vm283_vm2, %v264_v29  ;;  %v272_v37 = vmax.f32 %v226_v30, 0.0  ;;  %v241_v38 = vadd.f32 %v2421_v35, %v2151_v20  ;;  %v267_v44 = vmax.f32 %v2979_v32, 0.0 }
  0xcc   :  { %v2412_v40 = vpop.f32.mrf.mxu0  ;;  %2431 = vmatmul.mubr.msk.f32.vlgmr.msra.gmra.mxu1 %vm283_vm2, %v265_v31  ;;  %v235_v41 = vpop.f32.mrf.mxu1 }
  0xcd   :  { %v266_v42 = vmax.f32 %v2982_v36, 0.0  ;;  %2443 = vmatpush3.msra.mxu1 %v280_v18  ;;  %v236_v43 = vadd.f32 %v2151_v20, %v235_v41  ;;  %2458 = vmatprep.mubr.msk.f32.mxu0 %vm283_vm2, %v272_v37  ;;  %v211_v45 = vadd.f32 %v2412_v40, %v2151_v20  ;;  %v275_v47 = vmax.f32 %v241_v38, 0.0 }
  0xce   :  { %v205_v46 = vpop.f32.mrf.mxu0  ;;  %v2424_v48 = vpop.f32.mrf.mxu1  ;;  %2459 = vmatmul.mubr.msk.f32.vlgmr.msra.gmra.mxu0 %vm283_vm2, %v273_v34  ;;  %2470 = vmatprep.subr.mxu1 %v2193_v39 }
  0xcf   :  { %v206_v49 = vadd.f32 %v2151_v20, %v205_v46  ;;  %2433 = vmatprep.mubr.msk.f32.mxu1 %vm283_vm2, %v266_v42  ;;  %v274_v50 = vmax.f32 %v236_v43, 0.0  ;;  %v251_v51 = vadd.f32 %v2424_v48, %v2151_v20  ;;  %v269_v56 = vmax.f32 %v211_v45, 0.0 }
  0xd0   :  { %v2415_v52 = vpop.f32.mrf.mxu0  ;;  %2434 = vmatmul.mubr.msk.f32.gmra.mxu1 %vm283_vm2, %v267_v44  ;;  %v245_v53 = vpop.f32.mrf.mxu1 }
  0xd1   :  { %v268_v54 = vmax.f32 %v206_v49, 0.0  ;;  %v246_v55 = vadd.f32 %v2151_v20, %v245_v53  ;;  %2461 = vmatprep.mubr.msk.f32.mxu0 %vm283_vm2, %v274_v50  ;;  %v221_v57 = vadd.f32 %v2415_v52, %v2151_v20  ;;  %v277_v59 = vmax.f32 %v251_v51, 0.0  ;;  %v2200_v53 = vld [vmem:[%s3506_s4] ss:$0 sm:$0xff] }
  0xd2   :  { %v215_v58 = vpop.f32.mrf.mxu0  ;;  %2462 = vmatmul.mubr.msk.f32.gmra.mxu0 %vm283_vm2, %v275_v47  ;;  %v2427_v60 = vpop.f32.mrf.mxu1 }
  0xd3   :  { %v216_v61 = vadd.f32 %v2151_v20, %v215_v58  ;;  %2436 = vmatprep.mubr.msk.f32.mxu1 %vm283_vm2, %v268_v54  ;;  %v276_v62 = vmax.f32 %v246_v55, 0.0  ;;  %v261_v63 = vadd.f32 %v2427_v60, %v2151_v20  ;;  %v271_v3 = vmax.f32 %v221_v57, 0.0 }
  0xd4   :  { %2437 = vmatmul.mubr.msk.f32.gmra.mxu1 %vm283_vm2, %v269_v56  ;;  %v255_v0 = vpop.f32.mrf.mxu1 }
  0xd5   :  { %v270_v1 = vmax.f32 %v216_v61, 0.0  ;;  %2464 = vmatprep.mubr.msk.f32.mxu0 %vm283_vm2, %v276_v62  ;;  %v256_v2 = vadd.f32 %v2151_v20, %v255_v0  ;;  %v279_v4 = vmax.f32 %v261_v63, 0.0 }
  0xd6   :  { %2465 = vmatmul.mubr.msk.f32.gmra.mxu0 %vm283_vm2, %v277_v59 }
  0xd7   :  { %2439 = vmatprep.mubr.msk.f32.mxu1 %vm283_vm2, %v270_v1  ;;  %v278_v5 = vmax.f32 %v256_v2, 0.0 }
  0xd8   :  { %2440 = vmatmul.mubr.msk.f32.gmra.mxu1 %vm283_vm2, %v271_v3 }
  0xd9   :  { %2444 = vmatprep.mubr.f32.mxu1 %v2827_v6  ;;  %2467 = vmatprep.mubr.msk.f32.mxu0 %vm283_vm2, %v278_v5 }
  0xda   :  { %2468 = vmatmul.mubr.msk.f32.gmra.mxu0 %vm283_vm2, %v279_v4 }
  0xdb   :  { %2500 = vmatprep.mubr.msk.f32.mxu0 %vm806_vm3, %v798_v7 }
  0xdc   :  { %2445 = vmatmul.mubr.f32.vlgmr.msra.gmra.mxu1 %v2827_v6 }
  0xdd   :  { %2447 = vmatprep.mubr.msk.f32.mxu1 %vm283_vm2, %v272_v37  ;;  %2471 = vmatpush3.msra.mxu1 %v2193_v39 }
  0xde   :  { %2512 = vmatprep.subr.mxu1 %v2827_v6 }
  0xe0   :  { %2448 = vmatmul.mubr.msk.f32.gmra.mxu1 %vm283_vm2, %v273_v34 }
  0xe1   :  { %2450 = vmatprep.mubr.msk.f32.mxu1 %vm283_vm2, %v274_v50 }
  0xe4   :  { %2451 = vmatmul.mubr.msk.f32.gmra.mxu1 %vm283_vm2, %v275_v47 }
  0xe5   :  { %2453 = vmatprep.mubr.msk.f32.mxu1 %vm283_vm2, %v276_v62 }
  0xe8   :  { %2454 = vmatmul.mubr.msk.f32.gmra.mxu1 %vm283_vm2, %v277_v59 }
  0xe9   :  { %2472 = vmatprep.mubr.msk.f32.mxu1 %vm283_vm2, %v266_v42 }
  0xec   :  { %2473 = vmatmul.mubr.msk.f32.vlgmr.msra.gmra.mxu1 %vm283_vm2, %v267_v44 }
  0xed   :  { %2475 = vmatprep.mubr.msk.f32.mxu1 %vm283_vm2, %v268_v54  ;;  %2513 = vmatpush3.msra.mxu1 %v939_v8 }
  0xee   :  { %2514 = vmatprep.subr.mxu1 %v2827_v6 }
  0xf0   :  { %2476 = vmatmul.mubr.msk.f32.gmra.mxu1 %vm283_vm2, %v269_v56 }
  0xf1   :  { %2478 = vmatprep.mubr.msk.f32.mxu1 %vm283_vm2, %v270_v1 }
  0xf4   :  { %2479 = vmatmul.mubr.msk.f32.gmra.mxu1 %vm283_vm2, %v271_v3 }
  0xf5   :  { %2481 = vmatprep.mubr.f32.mxu1 %v2827_v6 }
  0xf8   :  { %2482 = vmatmul.mubr.f32.gmra.mxu1 %v2827_v6 }
  0xf9   :  { %2516 = vmatprep.mubr.msk.f32.mxu1 %vm2828_vm4, %v2827_v6 }
 0x18c   :  { %v2432_v9 = vpop.f32.mrf.mxu1 }
 0x18e   :  { %v374_v10 = vpop.f32.mrf.mxu1  ;;  %v2460_v17 = vpop.f32.mrf.mxu0 }
 0x190   :  { %v2435_v11 = vpop.f32.mrf.mxu1  ;;  %v613_v20 = vpop.f32.mrf.mxu0 }
 0x192   :  { %v384_v12 = vpop.f32.mrf.mxu1  ;;  %v2463_v23 = vpop.f32.mrf.mxu0 }
 0x194   :  { %v2438_v13 = vpop.f32.mrf.mxu1  ;;  %v623_v26 = vpop.f32.mrf.mxu0 }
 0x196   :  { %v394_v14 = vpop.f32.mrf.mxu1  ;;  %v2466_v29 = vpop.f32.mrf.mxu0 }
 0x198   :  { %v2441_v15 = vpop.f32.mrf.mxu1  ;;  %v633_v32 = vpop.f32.mrf.mxu0 }
 0x19a   :  { %v404_v16 = vpop.f32.mrf.mxu1  ;;  %v2469_v34 = vpop.f32.mrf.mxu0 }
 0x19c   :  { %v2446_v18 = vpop.f32.mrf.mxu1  ;;  %v643_v41 = vpop.f32.mrf.mxu0 }
 0x19d   :  { %v506_v52 = vadd.f32 %v2446_v18, %v2432_v9 }
 0x19e   :  { %v500_v19 = vpop.f32.mrf.mxu1 }
 0x19f   :  { %v501_v59 = vadd.f32 %v500_v19, %v374_v10  ;;  %v653_v1 = vadd.f32 %v2460_v17, %v506_v52  ;;  %v799_v19 = vld [vmem:[%s3507_s5 + $0x8] sm:$0xff]  ;;  %v3165_v52 = vld [vmem:[%s3510_s8 + $0x60] sm:$0xff] }
 0x1a0   :  { %v2449_v21 = vpop.f32.mrf.mxu1 }
 0x1a1   :  { %v516_v43 = vadd.f32 %v2449_v21, %v2435_v11  ;;  %v652_v7 = vadd.f32 %v613_v20, %v501_v59  ;;  %v800_v20 = vld [vmem:[%s3507_s5 + $0x10] sm:$0xff]  ;;  %v945_v21 = vld [vmem:[%s3508_s6 + $0x48] sm:$0xff] }
 0x1a2   :  { %v510_v22 = vpop.f32.mrf.mxu1  ;;  %v3228_v59 = vld [vmem:[%s3510_s8 + $0x28] sm:$0xff] }
 0x1a3   :  { %v511_v46 = vadd.f32 %v510_v22, %v384_v12  ;;  %v655_v55 = vadd.f32 %v2463_v23, %v516_v43  ;;  %v801_v22 = vld [vmem:[%s3507_s5 + $0x18] sm:$0xff]  ;;  %v802_v23 = vld [vmem:[%s3507_s5 + $0x20] sm:$0xff] }
 0x1a4   :  { %v2452_v24 = vpop.f32.mrf.mxu1 }
 0x1a5   :  { %v526_v36 = vadd.f32 %v2452_v24, %v2438_v13  ;;  %v654_v60 = vadd.f32 %v623_v26, %v511_v46  ;;  %v803_v24 = vld [vmem:[%s3507_s5 + $0x28] sm:$0xff]  ;;  %v805_v26 = vld [vmem:[%s3507_s5 + $0x38] sm:$0xff]  ;;  %v946_v46 = vld [vmem:[%s3508_s6 + $0x50] sm:$0xff] }
 0x1a6   :  { %v520_v25 = vpop.f32.mrf.mxu1 }
 0x1a7   :  { %v521_v39 = vadd.f32 %v520_v25, %v394_v14  ;;  %v657_v45 = vadd.f32 %v2466_v29, %v526_v36  ;;  %v804_v25 = vld [vmem:[%s3507_s5 + $0x30] sm:$0xff]  ;;  %v937_v29 = vld [vmem:[%s3508_s6 + $0x8] sm:$0xff] }
 0x1a8   :  { %v2455_v27 = vpop.f32.mrf.mxu1 }
 0x1a9   :  { %v536_v37 = vadd.f32 %v2455_v27, %v2441_v15  ;;  %v656_v50 = vadd.f32 %v633_v32, %v521_v39  ;;  %v938_v27 = vld [vmem:[%s3508_s6 + $0x10] sm:$0xff]  ;;  %v949_v39 = vld [vmem:[%s3508_s6 + $0x68] sm:$0xff] }
 0x1aa   :  { %v530_v28 = vpop.f32.mrf.mxu1  ;;  %2515 = vmatpush3.msra.mxu1 %v938_v27 }
 0x1ab   :  { %v531_v40 = vadd.f32 %v530_v28, %v404_v16  ;;  %v659_v44 = vadd.f32 %v2469_v34, %v536_v37  ;;  %2519 = vmatprep.subr.mxu1 %v2827_v6  ;;  %v944_v28 = vld [vmem:[%s3508_s6 + $0x40] sm:$0xff]  ;;  %v943_v37 = vld [vmem:[%s3508_s6 + $0x38] sm:$0xff] }
 0x1ac   :  { %v2474_v30 = vpop.f32.mrf.mxu1 }
 0x1ad   :  { %v658_v48 = vadd.f32 %v643_v41, %v531_v40  ;;  %v768_v5 = vadd.f32 %v2474_v30, %v653_v1  ;;  %v942_v40 = vld [vmem:[%s3508_s6 + $0x30] sm:$0xff] }
 0x1ae   :  { %v728_v31 = vpop.f32.mrf.mxu1 }
 0x1af   :  { %v767_v11 = vadd.f32 %v728_v31, %v652_v7  ;;  %v783_v13 = vadd.f32 %v2200_v53, %v768_v5  ;;  %v936_v31 = vld [vmem:[%s3508_s6] sm:$0xff] }
 0x1b0   :  { %v2477_v33 = vpop.f32.mrf.mxu1 }
 0x1b1   :  { %v770_v61 = vadd.f32 %v2477_v33, %v655_v55  ;;  %v782_v15 = vadd.f32 %v2200_v53, %v767_v11  ;;  %v791_v17 = vmax.f32 %v783_v13, 0.0  ;;  %v941_v33 = vld [vmem:[%s3508_s6 + $0x28] sm:$0xff] }
 0x1b2   :  { %v738_v35 = vpop.f32.mrf.mxu1  ;;  %v3192_v55 = vld [vmem:[%s3510_s8 + $0x48] sm:$0xff] }
 0x1b3   :  { %v769_v2 = vadd.f32 %v738_v35, %v654_v60  ;;  %v785_v8 = vadd.f32 %v2200_v53, %v770_v61  ;;  %v790_v18 = vmax.f32 %v782_v15, 0.0  ;;  %v940_v35 = vld [vmem:[%s3508_s6 + $0x20] sm:$0xff]  ;;  %v3246_v61 = vld [vmem:[%s3510_s8 + $0x18] sm:$0xff] }
 0x1b4   :  { %v2480_v38 = vpop.f32.mrf.mxu1  ;;  %v3237_v60 = vld [vmem:[%s3510_s8 + $0x20] sm:$0xff] }
 0x1b5   :  { %v772_v49 = vadd.f32 %v2480_v38, %v657_v45  ;;  %v784_v12 = vadd.f32 %v2200_v53, %v769_v2  ;;  %v793_v14 = vmax.f32 %v785_v8, 0.0 }
 0x1b6   :  { %v748_v42 = vpop.f32.mrf.mxu1 }
 0x1b7   :  { %v771_v56 = vadd.f32 %v748_v42, %v656_v50  ;;  %v787_v62 = vadd.f32 %v2200_v53, %v772_v49  ;;  %v792_v16 = vmax.f32 %v784_v12, 0.0  ;;  %v948_v42 = vld [vmem:[%s3508_s6 + $0x60] sm:$0xff]  ;;  %v951_v49 = vld [vmem:[%s3508_s6 + $0x78] sm:$0xff]  ;;  %v3152_v50 = vld [vmem:[%s3510_s8 + $0x68] sm:$0xff] }
 0x1b8   :  { %v2483_v47 = vpop.f32.mrf.mxu1 }
 0x1b9   :  { %v774_v51 = vadd.f32 %v2483_v47, %v659_v44  ;;  %v786_v3 = vadd.f32 %v2200_v53, %v771_v56  ;;  %v795_v9 = vmax.f32 %v787_v62, 0.0  ;;  %v947_v44 = vld [vmem:[%s3508_s6 + $0x58] sm:$0xff]  ;;  %v3201_v56 = vld [vmem:[%s3510_s8 + $0x40] sm:$0xff]  ;;  %v3255_v62 = vld [vmem:[%s3510_s8 + $0x10] sm:$0xff] }
 0x1ba   :  { %v758_v54 = vpop.f32.mrf.mxu1  ;;  %v3131_v47 = vld [vmem:[%s3510_s8 + $0x78] sm:$0xff] }
 0x1bb   :  { %v789_v57 = vadd.f32 %v2200_v53, %v774_v51  ;;  %v773_v58 = vadd.f32 %v758_v54, %v658_v48  ;;  %v794_v10 = vmax.f32 %v786_v3, 0.0  ;;  %v3139_v48 = vld [vmem:[%s3510_s8 + $0x70] sm:$0xff] }
 0x1bc   :  { %v950_v51 = vld [vmem:[%s3508_s6 + $0x70] sm:$0xff]  ;;  %s2830_s6 = smov 32  }
 0x1bd   :  { %v797_v63 = vmax.f32 %v789_v57, 0.0  ;;  %v788_v0 = vadd.f32 %v2200_v53, %v773_v58  ;;  %v3174_v53 = vld [vmem:[%s3510_s8 + $0x58] sm:$0xff]  ;;  %v3183_v54 = vld [vmem:[%s3510_s8 + $0x50] sm:$0xff] }
 0x1be   :  { %v3210_v57 = vld [vmem:[%s3510_s8 + $0x38] sm:$0xff]  ;;  %v3219_v58 = vld [vmem:[%s3510_s8 + $0x30] sm:$0xff] }
 0x1bf   :  { %v796_v4 = vmax.f32 %v788_v0, 0.0  ;;  %2484 = vmatprep.subr.mxu0 %v797_v63  ;;  %v3273_v0 = vld [vmem:[%s3510_s8] sm:$0xff] }
 0x1c0   :  { %2485 = vmatpush3.msra.mxu0 %v797_v63  ;;  %v3264_v63 = vld [vmem:[%s3510_s8 + $0x8] sm:$0xff] }
 0x1c1   :  { %2486 = vmatprep.subr.mxu0 %v796_v4 }
 0x1c2   :  { %2487 = vmatpush3.msra.mxu0 %v796_v4 }
 0x1c3   :  { %2488 = vmatprep.subr.mxu0 %v795_v9 }
 0x1c4   :  { %2489 = vmatpush3.msra.mxu0 %v795_v9 }
 0x1c5   :  { %2490 = vmatprep.subr.mxu0 %v794_v10 }
 0x1c6   :  { %2491 = vmatpush3.msra.mxu0 %v794_v10 }
 0x1c7   :  { %2492 = vmatprep.subr.mxu0 %v793_v14 }
 0x1c8   :  { %2493 = vmatpush3.msra.mxu0 %v793_v14 }
 0x1c9   :  { %2494 = vmatprep.subr.mxu0 %v792_v16 }
 0x1ca   :  { %2495 = vmatpush3.msra.mxu0 %v792_v16 }
 0x1cb   :  { %2496 = vmatprep.subr.mxu0 %v791_v17 }
 0x1cc   :  { %2497 = vmatpush3.msra.mxu0 %v791_v17 }
 0x1cd   :  { %2498 = vmatprep.subr.mxu0 %v790_v18 }
 0x1ce   :  { %2499 = vmatpush3.msra.mxu0 %v790_v18 }
 0x1cf   :  { %2501 = vmatmul.mubr.msk.f32.vlgmr.msra.gmra.mxu0 %vm806_vm3, %v799_v19  ;;  %2540 = vmatprep.subr.mxu0 %v2827_v6 }
 0x1d0   :  { %2503 = vmatprep.mubr.msk.f32.mxu0 %vm806_vm3, %v800_v20  ;;  %2541 = vmatpush3.msra.mxu0 %v945_v21 }
 0x1d1   :  { %2542 = vmatprep.subr.mxu0 %v2827_v6 }
 0x1d2   :  { %2543 = vmatpush3.msra.mxu0 %v944_v28 }
 0x1d3   :  { %2504 = vmatmul.mubr.msk.f32.gmra.mxu0 %vm806_vm3, %v801_v22  ;;  %2554 = vmatprep.subr.mxu0 %v2827_v6 }
 0x1d4   :  { %2506 = vmatprep.mubr.msk.f32.mxu0 %vm806_vm3, %v802_v23 }
 0x1d7   :  { %2507 = vmatmul.mubr.msk.f32.gmra.mxu0 %vm806_vm3, %v803_v24 }
 0x1d8   :  { %2509 = vmatprep.mubr.msk.f32.mxu0 %vm806_vm3, %v804_v25  ;;  %v2217_v25 = vld [vmem:[%s3509_s7] ss:$0 sm:$0xff]  ;;  %s2829_s7 = smov 64  }
 0x1db   :  { %2510 = vmatmul.mubr.msk.f32.gmra.mxu0 %vm806_vm3, %v805_v26 }
 0x1dc   :  { %2544 = vmatprep.mubr.msk.f32.mxu0 %vm2828_vm4, %v2827_v6 }
 0x28f   :  { %v2502_v30 = vpop.f32.mrf.mxu0 }
 0x290   :  { %2517 = vmatmul.mubr.msk.f32.vlgmr.msra.gmra.mxu1 %vm952_vm5, %v2502_v30 }
 0x291   :  { %v897_v32 = vpop.f32.mrf.mxu0  ;;  %2520 = vmatpush3.msra.mxu1 %v937_v29  ;;  %2523 = vmatprep.mubr.msk.f32.mxu1 %vm2828_vm4, %v2827_v6 }
 0x292   :  { %2521 = vmatprep.subr.mxu1 %v2827_v6 }
 0x293   :  { %v2505_v34 = vpop.f32.mrf.mxu0  ;;  %2522 = vmatpush3.msra.mxu1 %v936_v31 }
 0x294   :  { %2524 = vmatmul.mubr.msk.f32.vlgmr.msra.gmra.mxu1 %vm952_vm5, %v897_v32  ;;  %2526 = vmatprep.subr.mxu1 %v2827_v6 }
 0x295   :  { %v907_v36 = vpop.f32.mrf.mxu0  ;;  %2527 = vmatpush3.msra.mxu1 %v941_v33  ;;  %2530 = vmatprep.mubr.msk.f32.mxu1 %vm2828_vm4, %v2827_v6  ;;  %v1551_v33 = vlaneseq }
 0x296   :  { %2528 = vmatprep.subr.mxu1 %v2827_v6 }
 0x297   :  { %v2508_v38 = vpop.f32.mrf.mxu0  ;;  %2529 = vmatpush3.msra.mxu1 %v940_v35 }
 0x298   :  { %2531 = vmatmul.mubr.msk.f32.vlgmr.msra.gmra.mxu1 %vm952_vm5, %v907_v36  ;;  %2533 = vmatprep.subr.mxu1 %v2827_v6 }
 0x299   :  { %v917_v41 = vpop.f32.mrf.mxu0  ;;  %2534 = vmatpush3.msra.mxu1 %v943_v37  ;;  %2537 = vmatprep.mubr.msk.f32.mxu1 %vm2828_vm4, %v2827_v6 }
 0x29a   :  { %2535 = vmatprep.subr.mxu1 %v2827_v6  ;;  %2545 = vmatmul.mubr.msk.f32.vlgmr.msra.gmra.mxu0 %vm952_vm5, %v917_v41 }
 0x29b   :  { %2555 = vmatpush3.msra.mxu0 %v949_v39  ;;  %v2511_v43 = vpop.f32.mrf.mxu0  ;;  %2536 = vmatpush3.msra.mxu1 %v942_v40 }
 0x29c   :  { %2556 = vmatprep.subr.mxu0 %v2827_v6  ;;  %2538 = vmatmul.mubr.msk.f32.vlgmr.msra.gmra.mxu1 %vm952_vm5, %v2505_v34  ;;  %v3335_v34 = vand.u32 127, %v1551_v33 }
 0x29d   :  { %2547 = vmatprep.subr.mxu1 %v2827_v6  ;;  %2557 = vmatpush3.msra.mxu0 %v948_v42  ;;  %v927_v45 = vpop.f32.mrf.mxu0 }
 0x29e   :  { %2548 = vmatpush3.msra.mxu1 %v947_v44  ;;  %2558 = vmatprep.mubr.msk.f32.mxu0 %vm2828_vm4, %v2827_v6  ;;  %vm1553_vm6 = vcmp.ge.s32.totalorder %v3335_v34, 96  ;;  %vm1557_vm7 = vcmp.lt.s32.totalorder %v3335_v34, 64  ;;  %vm1554_vm8 = vcmp.ge.s32.totalorder %v3335_v34, 64  ;;  %vm1555_vm9 = vcmp.lt.s32.totalorder %v3335_v34, 96 }
 0x29f   :  { %2568 = vmatprep.subr.mxu0 %v2827_v6  ;;  %2549 = vmatprep.subr.mxu1 %v2827_v6  ;;  %vm3351_vm10 = vmand %vm1554_vm8, %vm1555_vm9 }
 0x2a0   :  { %2559 = vmatmul.mubr.msk.f32.vlgmr.msra.gmra.mxu0 %vm952_vm5, %v927_v45  ;;  %2550 = vmatpush3.msra.mxu1 %v946_v46 }
 0x2a1   :  { %2569 = vmatpush3.msra.mxu0 %v3131_v47  ;;  %2551 = vmatprep.mubr.msk.f32.mxu1 %vm2828_vm4, %v2827_v6 }
 0x2a2   :  { %2570 = vmatprep.subr.mxu0 %v2827_v6  ;;  %2552 = vmatmul.mubr.msk.f32.vlgmr.msra.gmra.mxu1 %vm952_vm5, %v2508_v38 }
 0x2a3   :  { %2561 = vmatprep.subr.mxu1 %v2827_v6  ;;  %2571 = vmatpush3.msra.mxu0 %v3139_v48 }
 0x2a4   :  { %2562 = vmatpush3.msra.mxu1 %v951_v49  ;;  %2572 = vmatprep.subr.mxu0 %v2827_v6 }
 0x2a5   :  { %2563 = vmatprep.subr.mxu1 %v2827_v6  ;;  %2573 = vmatpush3.msra.mxu0 %v3152_v50 }
 0x2a6   :  { %2564 = vmatpush3.msra.mxu1 %v950_v51  ;;  %2565 = vmatprep.mubr.msk.f32.mxu1 %vm2828_vm4, %v2827_v6 }
 0x2a7   :  { %2574 = vmatprep.subr.mxu0 %v2827_v6  ;;  %2566 = vmatmul.mubr.msk.f32.vlgmr.msra.gmra.mxu1 %vm952_vm5, %v2511_v43 }
 0x2a8   :  { %2575 = vmatpush3.msra.mxu0 %v3165_v52  ;;  %2600 = vmatprep.mubr.msk.f32.mxu0 %vm2828_vm4, %v2827_v6 }
 0x2a9   :  { %2576 = vmatprep.subr.mxu0 %v2827_v6  ;;  %2603 = vmatprep.subr.mxu1 %v2827_v6 }
 0x2aa   :  { %2577 = vmatpush3.msra.mxu0 %v3174_v53  ;;  %2604 = vmatpush3.msra.mxu1 %v3131_v47 }
 0x2ab   :  { %2578 = vmatprep.subr.mxu0 %v2827_v6  ;;  %2605 = vmatprep.subr.mxu1 %v2827_v6 }
 0x2ac   :  { %2579 = vmatpush3.msra.mxu0 %v3183_v54  ;;  %2606 = vmatpush3.msra.mxu1 %v3139_v48 }
 0x2ad   :  { %2580 = vmatprep.subr.mxu0 %v2827_v6  ;;  %2607 = vmatprep.subr.mxu1 %v2827_v6 }
 0x2ae   :  { %2581 = vmatpush3.msra.mxu0 %v3192_v55  ;;  %2608 = vmatpush3.msra.mxu1 %v3152_v50 }
 0x2af   :  { %2582 = vmatprep.subr.mxu0 %v2827_v6  ;;  %2609 = vmatprep.subr.mxu1 %v2827_v6 }
 0x2b0   :  { %2583 = vmatpush3.msra.mxu0 %v3201_v56  ;;  %2610 = vmatpush3.msra.mxu1 %v3165_v52 }
 0x2b1   :  { %2584 = vmatprep.subr.mxu0 %v2827_v6  ;;  %2611 = vmatprep.subr.mxu1 %v2827_v6 }
 0x2b2   :  { %2585 = vmatpush3.msra.mxu0 %v3210_v57  ;;  %2612 = vmatpush3.msra.mxu1 %v3174_v53 }
 0x2b3   :  { %2586 = vmatprep.subr.mxu0 %v2827_v6  ;;  %2613 = vmatprep.subr.mxu1 %v2827_v6 }
 0x2b4   :  { %2587 = vmatpush3.msra.mxu0 %v3219_v58  ;;  %2614 = vmatpush3.msra.mxu1 %v3183_v54 }
 0x2b5   :  { %2588 = vmatprep.subr.mxu0 %v2827_v6  ;;  %2615 = vmatprep.subr.mxu1 %v2827_v6 }
 0x2b6   :  { %2589 = vmatpush3.msra.mxu0 %v3228_v59  ;;  %2616 = vmatpush3.msra.mxu1 %v3192_v55 }
 0x2b7   :  { %2590 = vmatprep.subr.mxu0 %v2827_v6  ;;  %2617 = vmatprep.subr.mxu1 %v2827_v6 }
 0x2b8   :  { %2591 = vmatpush3.msra.mxu0 %v3237_v60  ;;  %2618 = vmatpush3.msra.mxu1 %v3201_v56 }
 0x2b9   :  { %2592 = vmatprep.subr.mxu0 %v2827_v6  ;;  %2619 = vmatprep.subr.mxu1 %v2827_v6 }
 0x2ba   :  { %2593 = vmatpush3.msra.mxu0 %v3246_v61  ;;  %2620 = vmatpush3.msra.mxu1 %v3210_v57 }
 0x2bb   :  { %2594 = vmatprep.subr.mxu0 %v2827_v6  ;;  %2621 = vmatprep.subr.mxu1 %v2827_v6 }
 0x2bc   :  { %2595 = vmatpush3.msra.mxu0 %v3255_v62  ;;  %2622 = vmatpush3.msra.mxu1 %v3219_v58 }
 0x2bd   :  { %2596 = vmatprep.subr.mxu0 %v2827_v6  ;;  %2623 = vmatprep.subr.mxu1 %v2827_v6 }
 0x2be   :  { %2597 = vmatpush3.msra.mxu0 %v3264_v63  ;;  %2624 = vmatpush3.msra.mxu1 %v3228_v59 }
 0x2bf   :  { %2598 = vmatprep.subr.mxu0 %v2827_v6  ;;  %2625 = vmatprep.subr.mxu1 %v2827_v6 }
 0x2c0   :  { %2599 = vmatpush3.msra.mxu0 %v3273_v0  ;;  %2626 = vmatpush3.msra.mxu1 %v3237_v60 }
 0x2c1   :  { %2601 = vmatmul.mubr.f32.vlgmr.msra.gmra.mxu0 %v2827_v6  ;;  %2627 = vmatprep.subr.mxu1 %v2827_v6 }
 0x2c2   :  { %2628 = vmatpush3.msra.mxu1 %v3246_v61  ;;  %2635 = vmatprep.mubr.msk.f32.mxu1 %vm2828_vm4, %v2827_v6 }
 0x2c3   :  { %2629 = vmatprep.subr.mxu1 %v2827_v6  ;;  %2638 = vmatprep.subr.mxu0 %v2827_v6 }
 0x2c4   :  { %2630 = vmatpush3.msra.mxu1 %v3255_v62  ;;  %2639 = vmatpush3.msra.mxu0 %v3131_v47 }
 0x2c5   :  { %2631 = vmatprep.subr.mxu1 %v2827_v6  ;;  %2640 = vmatprep.subr.mxu0 %v2827_v6 }
 0x2c6   :  { %2632 = vmatpush3.msra.mxu1 %v3264_v63  ;;  %2641 = vmatpush3.msra.mxu0 %v3139_v48 }
 0x2c7   :  { %2633 = vmatprep.subr.mxu1 %v2827_v6  ;;  %2642 = vmatprep.subr.mxu0 %v2827_v6 }
 0x2c8   :  { %2634 = vmatpush3.msra.mxu1 %v3273_v0  ;;  %2643 = vmatpush3.msra.mxu0 %v3152_v50 }
 0x2c9   :  { %2644 = vmatprep.subr.mxu0 %v2827_v6  ;;  %2670 = vmatprep.mubr.msk.f32.mxu0 %vm2828_vm4, %v2827_v6 }
 0x2ca   :  { %2645 = vmatpush3.msra.mxu0 %v3165_v52  ;;  %2673 = vmatprep.subr.mxu1 %v2827_v6 }
 0x2cb   :  { %2646 = vmatprep.subr.mxu0 %v2827_v6 }
 0x2cc   :  { %2647 = vmatpush3.msra.mxu0 %v3174_v53 }
 0x2cd   :  { %2648 = vmatprep.subr.mxu0 %v2827_v6 }
 0x2ce   :  { %2649 = vmatpush3.msra.mxu0 %v3183_v54 }
 0x2cf   :  { %2650 = vmatprep.subr.mxu0 %v2827_v6 }
 0x2d0   :  { %2651 = vmatpush3.msra.mxu0 %v3192_v55 }
 0x2d1   :  { %2652 = vmatprep.subr.mxu0 %v2827_v6 }
 0x2d2   :  { %2653 = vmatpush3.msra.mxu0 %v3201_v56 }
 0x2d3   :  { %2654 = vmatprep.subr.mxu0 %v2827_v6 }
 0x2d4   :  { %2655 = vmatpush3.msra.mxu0 %v3210_v57 }
 0x2d5   :  { %2656 = vmatprep.subr.mxu0 %v2827_v6 }
 0x2d6   :  { %2657 = vmatpush3.msra.mxu0 %v3219_v58 }
 0x2d7   :  { %2658 = vmatprep.subr.mxu0 %v2827_v6 }
 0x2d8   :  { %2659 = vmatpush3.msra.mxu0 %v3228_v59 }
 0x2d9   :  { %2660 = vmatprep.subr.mxu0 %v2827_v6 }
 0x2da   :  { %2661 = vmatpush3.msra.mxu0 %v3237_v60 }
 0x2db   :  { %2662 = vmatprep.subr.mxu0 %v2827_v6 }
 0x2dc   :  { %2663 = vmatpush3.msra.mxu0 %v3246_v61 }
 0x2dd   :  { %2664 = vmatprep.subr.mxu0 %v2827_v6 }
 0x2de   :  { %2665 = vmatpush3.msra.mxu0 %v3255_v62 }
 0x2df   :  { %2666 = vmatprep.subr.mxu0 %v2827_v6 }
 0x2e0   :  { %2667 = vmatpush3.msra.mxu0 %v3264_v63 }
 0x2e1   :  { %2668 = vmatprep.subr.mxu0 %v2827_v6 }
 0x2e2   :  { %2669 = vmatpush3.msra.mxu0 %v3273_v0 }
 0x2e3   :  { %2708 = vmatprep.subr.mxu0 %v2827_v6 }
 0x350   :  { %v1022_v1 = vpop.f32.mrf.mxu1 }
 0x352   :  { %v2518_v2 = vpop.f32.mrf.mxu1 }
 0x354   :  { %v1095_v3 = vpop.f32.mrf.mxu1 }
 0x355   :  { %v1096_v17 = vadd.f32 %v1095_v3, %v1022_v1 }
 0x356   :  { %v2525_v4 = vpop.f32.mrf.mxu1 }
 0x358   :  { %v1168_v5 = vpop.f32.mrf.mxu1 }
 0x359   :  { %v1172_v19 = vadd.f32 %v1168_v5, %v1096_v17 }
 0x35a   :  { %v2532_v7 = vpop.f32.mrf.mxu1  ;;  %v1316_v8 = vpop.f32.mrf.mxu0 }
 0x35c   :  { %v1242_v9 = vpop.f32.mrf.mxu1  ;;  %v2546_v11 = vpop.f32.mrf.mxu0 }
 0x35d   :  { %v1246_v20 = vadd.f32 %v1242_v9, %v1172_v19 }
 0x35e   :  { %v2539_v12 = vpop.f32.mrf.mxu1 }
 0x35f   :  { %v1320_v21 = vadd.f32 %v1316_v8, %v1246_v20 }
 0x360   :  { %v1464_v10 = vpop.f32.mrf.mxu0 }
 0x362   :  { %v1390_v13 = vpop.f32.mrf.mxu1  ;;  %v2560_v14 = vpop.f32.mrf.mxu0 }
 0x363   :  { %v1394_v22 = vadd.f32 %v1390_v13, %v1320_v21 }
 0x364   :  { %v2553_v15 = vpop.f32.mrf.mxu1 }
 0x365   :  { %v1468_v23 = vadd.f32 %v1464_v10, %v1394_v22 }
 0x367   :  { %v1538_v16 = vpop.f32.mrf.mxu1 }
 0x368   :  { %v1542_v24 = vadd.f32 %v1538_v16, %v1468_v23 }
 0x369   :  { %v2567_v18 = vpop.f32.mrf.mxu1 }
 0x36a   :  { %v3332_v26 = vadd.f32 %v2217_v25, %v1542_v24 }
 0x381   :  { %v1640_v27 = vpop.f32.mrf.mxu0 }
 0x382   :  { %v1644_v28 = vadd.f32 %v1640_v27, %v3332_v26 }
 0x383   :  { %v2602_v29 = vpop.f32.mrf.mxu0 }
 0x384   :  { %v2218_v30 = vmul.f32 -1.442695, %v1644_v28 }
 0x386   :  { %2751 = vpow2.f32 %v2218_v30 }
 0x387   :  { %2753 = vtanh.f32 %v1644_v28 }
 0x393   :  { %v2752_v31 = vpop.eup %2751 }
 0x394   :  { %v1649_v32 = vadd.f32 1.0, %v2752_v31  ;;  %v2754_v35 = vpop.eup %2753 }
 0x396   :  { %2755 = vrcp.f32 %v1649_v32 }
 0x3a3   :  { %v2756_v36 = vpop.eup %2755 }
 0x3a4   :  { %v1652_v37 = vsel %vm1553_vm6, %v2754_v35, %v2756_v36 }
 0x3a5   :  { %1653 = vrot.lane.b32.xlu0 %v1652_v37, %s2829_s7  ;;  %v1658_v40 = vmul.f32 0.0, %v1652_v37 }
 0x417   :  { %v1654_v38 = vpop.permute.xlu0 %1653 }
 0x418   :  { %v1655_v39 = vmul.f32 %v1654_v38, %v1652_v37 }
 0x41a   :  { %1656 = vrot.lane.b32.xlu0 %v1655_v39, %s2830_s6 }
 0x48c   :  { %v1657_v41 = vpop.permute.xlu0 %1656 }
 0x48d   :  { %v1659_v42 = vadd.f32 %v1658_v40, %v1657_v41 }
 0x48f   :  { %1660 = vrot.lane.b32.xlu1 %v1659_v42, %s2829_s7 }
 0x501   :  { %v1661_v43 = vpop.permute.xlu1 %1660 }
 0x502   :  { %v3346_v44 = vsel %vm1557_vm7, %v1659_v42, %v1661_v43 }
 0x503   :  { %2757 = vtanh.f32 %v3346_v44 }
 0x510   :  { %v2758_v45 = vpop.eup %2757 }
 0x511   :  { %v1664_v49 = vmul.f32 %v2758_v45, %v1652_v37 }
 0x513   :  { %2636 = vmatmul.mubr.msk.f32.vlgmr.msra.gmra.mxu1 %vm3351_vm10, %v1664_v49 }
 0x514   :  { %2674 = vmatpush3.msra.mxu1 %v3131_v47  ;;  %2705 = vmatprep.mubr.msk.f32.mxu1 %vm2828_vm4, %v2827_v6 }
 0x515   :  { %2675 = vmatprep.subr.mxu1 %v2827_v6 }
 0x516   :  { %2676 = vmatpush3.msra.mxu1 %v3139_v48 }
 0x517   :  { %2677 = vmatprep.subr.mxu1 %v2827_v6 }
 0x518   :  { %2678 = vmatpush3.msra.mxu1 %v3152_v50 }
 0x519   :  { %2679 = vmatprep.subr.mxu1 %v2827_v6 }
 0x51a   :  { %2680 = vmatpush3.msra.mxu1 %v3165_v52 }
 0x51b   :  { %2681 = vmatprep.subr.mxu1 %v2827_v6 }
 0x51c   :  { %2682 = vmatpush3.msra.mxu1 %v3174_v53 }
 0x51d   :  { %2683 = vmatprep.subr.mxu1 %v2827_v6 }
 0x51e   :  { %2684 = vmatpush3.msra.mxu1 %v3183_v54 }
 0x51f   :  { %2685 = vmatprep.subr.mxu1 %v2827_v6 }
 0x520   :  { %2686 = vmatpush3.msra.mxu1 %v3192_v55 }
 0x521   :  { %2687 = vmatprep.subr.mxu1 %v2827_v6 }
 0x522   :  { %2688 = vmatpush3.msra.mxu1 %v3201_v56 }
 0x523   :  { %2689 = vmatprep.subr.mxu1 %v2827_v6 }
 0x524   :  { %2690 = vmatpush3.msra.mxu1 %v3210_v57 }
 0x525   :  { %2691 = vmatprep.subr.mxu1 %v2827_v6 }
 0x526   :  { %2692 = vmatpush3.msra.mxu1 %v3219_v58 }
 0x527   :  { %2693 = vmatprep.subr.mxu1 %v2827_v6 }
 0x528   :  { %2694 = vmatpush3.msra.mxu1 %v3228_v59 }
 0x529   :  { %2695 = vmatprep.subr.mxu1 %v2827_v6 }
 0x52a   :  { %2696 = vmatpush3.msra.mxu1 %v3237_v60 }
 0x52b   :  { %2697 = vmatprep.subr.mxu1 %v2827_v6 }
 0x52c   :  { %2698 = vmatpush3.msra.mxu1 %v3246_v61 }
 0x52d   :  { %2699 = vmatprep.subr.mxu1 %v2827_v6 }
 0x52e   :  { %2700 = vmatpush3.msra.mxu1 %v3255_v62 }
 0x52f   :  { %2701 = vmatprep.subr.mxu1 %v2827_v6 }
 0x530   :  { %2702 = vmatpush3.msra.mxu1 %v3264_v63  ;;  %v1763_v63 = vrot.slane %v3346_v44, 6 }
 0x531   :  { %2703 = vmatprep.subr.mxu1 %v2827_v6 }
 0x532   :  { %2704 = vmatpush3.msra.mxu1 %v3273_v0 }
 0x5d3   :  { %v1732_v47 = vpop.f32.mrf.mxu1 }
 0x5d4   :  { %v1737_v48 = vrot.slane %v1732_v47, 6 }
 0x5d5   :  { %v2637_v50 = vpop.f32.mrf.mxu1 }
 0x5d6   :  { %v1739_v51 = vadd.f32 %v1737_v48, %v3332_v26 }
 0x5d8   :  { %v2220_v52 = vmul.f32 -1.442695, %v1739_v51 }
 0x5da   :  { %2759 = vpow2.f32 %v2220_v52 }
 0x5db   :  { %2761 = vtanh.f32 %v1739_v51 }
 0x5e7   :  { %v2760_v53 = vpop.eup %2759 }
 0x5e8   :  { %v1744_v54 = vadd.f32 1.0, %v2760_v53  ;;  %v2762_v55 = vpop.eup %2761 }
 0x5ea   :  { %2763 = vrcp.f32 %v1744_v54 }
 0x5f7   :  { %v2764_v56 = vpop.eup %2763 }
 0x5f8   :  { %v1747_v57 = vsel %vm1553_vm6, %v2762_v55, %v2764_v56  ;;  %v2040_v56 = vld [vmem:[%s3511_s9 + $0x70] sm:$0xff] }
 0x5f9   :  { %v1749_v58 = vrot.slane %v1747_v57, 2  ;;  %v1765_v1 = vmul.f32 %v1763_v63, %v1747_v57  ;;  %v2036_v63 = vld [vmem:[%s3511_s9 + $0x50] sm:$0xff] }
 0x5fb   :  { %1751 = vrot.lane.b32.xlu1 %v1749_v58, %s2829_s7  ;;  %v2039_v58 = vld [vmem:[%s3511_s9 + $0x68] sm:$0xff] }
 0x66d   :  { %v1752_v59 = vpop.permute.xlu1 %1751 }
 0x66e   :  { %v1754_v60 = vrot.slane %v1752_v59, 6 }
 0x670   :  { %v1756_v61 = vmul.f32 %v1754_v60, %v1747_v57  ;;  %v2038_v60 = vld [vmem:[%s3511_s9 + $0x60] sm:$0xff] }
 0x672   :  { %v1758_v62 = vrot.slane %v1756_v61, 2 }
 0x674   :  { %1760 = vrot.lane.b32.xlu0 %v1758_v62, %s2830_s6  ;;  %v2037_v62 = vld [vmem:[%s3511_s9 + $0x58] sm:$0xff] }
 0x6e6   :  { %v1761_v0 = vpop.permute.xlu0 %1760 }
 0x6e7   :  { %v1767_v2 = vrot.slane %v1761_v0, 6  ;;  %v2035_v0 = vld [vmem:[%s3511_s9 + $0x48] sm:$0xff] }
 0x6e9   :  { %v1769_v3 = vadd.f32 %v1767_v2, %v1765_v1  ;;  %v2034_v1 = vld [vmem:[%s3511_s9 + $0x40] sm:$0xff]  ;;  %v2033_v2 = vld [vmem:[%s3511_s9 + $0x38] sm:$0xff] }
 0x6eb   :  { %v1771_v4 = vrot.slane %v1769_v3, 2 }
 0x6ed   :  { %1773 = vrot.lane.b32.xlu1 %v1771_v4, %s2829_s7 }
 0x75f   :  { %v1774_v5 = vpop.permute.xlu1 %1773 }
 0x760   :  { %v1776_v7 = vrot.slane %v1774_v5, 6  ;;  %v2032_v5 = vld [vmem:[%s3511_s9 + $0x30] sm:$0xff] }
 0x762   :  { %v1778_v8 = vsel %vm1557_vm7, %v1769_v3, %v1776_v7 }
 0x763   :  { %2765 = vtanh.f32 %v1778_v8  ;;  %v1882_v29 = vrot.slane %v1778_v8, 6 }
 0x770   :  { %v2766_v9 = vpop.eup %2765 }
 0x771   :  { %v1780_v11 = vmul.f32 %v2766_v9, %v1747_v57  ;;  %v2031_v9 = vld [vmem:[%s3511_s9 + $0x28] sm:$0xff] }
 0x773   :  { %v1781_v12 = vsel %vm3351_vm10, %v1780_v11, 0.0 }
 0x774   :  { %v1783_v10 = vrot.slane %v1781_v12, 2  ;;  %v2030_v12 = vld [vmem:[%s3511_s9 + $0x20] sm:$0xff] }
 0x776   :  { %2671 = vmatmul.mubr.f32.vlgmr.msra.gmra.mxu0 %v1783_v10 }
 0x777   :  { %2740 = vmatprep.mubr.msk.f32.mxu0 %vm2828_vm4, %v2827_v6 }
 0x836   :  { %v1851_v13 = vpop.f32.mrf.mxu0 }
 0x837   :  { %v1856_v14 = vrot.slane %v1851_v13, 4  ;;  %v2029_v13 = vld [vmem:[%s3511_s9 + $0x18] sm:$0xff] }
 0x838   :  { %v2672_v15 = vpop.f32.mrf.mxu0 }
 0x839   :  { %v1858_v16 = vadd.f32 %v1856_v14, %v3332_v26  ;;  %v2028_v14 = vld [vmem:[%s3511_s9 + $0x10] sm:$0xff]  ;;  %v2027_v15 = vld [vmem:[%s3511_s9 + $0x8] sm:$0xff] }
 0x83b   :  { %v2221_v17 = vmul.f32 -1.442695, %v1858_v16 }
 0x83d   :  { %2767 = vpow2.f32 %v2221_v17 }
 0x83e   :  { %2769 = vtanh.f32 %v1858_v16  ;;  %v2026_v16 = vld [vmem:[%s3511_s9] sm:$0xff] }
 0x84a   :  { %v2768_v18 = vpop.eup %2767 }
 0x84b   :  { %v1863_v19 = vadd.f32 1.0, %v2768_v18  ;;  %v2770_v20 = vpop.eup %2769 }
 0x84d   :  { %2771 = vrcp.f32 %v1863_v19 }
 0x85a   :  { %v2772_v21 = vpop.eup %2771 }
 0x85b   :  { %v1866_v22 = vsel %vm1553_vm6, %v2770_v20, %v2772_v21 }
 0x85c   :  { %v1868_v23 = vrot.slane %v1866_v22, 4  ;;  %v1884_v31 = vmul.f32 %v1882_v29, %v1866_v22 }
 0x85e   :  { %1870 = vrot.lane.b32.xlu0 %v1868_v23, %s2829_s7 }
 0x8d0   :  { %v1871_v24 = vpop.permute.xlu0 %1870 }
 0x8d1   :  { %v1873_v25 = vrot.slane %v1871_v24, 4 }
 0x8d3   :  { %v1875_v27 = vmul.f32 %v1873_v25, %v1866_v22 }
 0x8d5   :  { %v1877_v28 = vrot.slane %v1875_v27, 4 }
 0x8d7   :  { %1879 = vrot.lane.b32.xlu1 %v1877_v28, %s2830_s6 }
 0x949   :  { %v1880_v30 = vpop.permute.xlu1 %1879 }
 0x94a   :  { %v1886_v32 = vrot.slane %v1880_v30, 4 }
 0x94c   :  { %v1888_v33 = vadd.f32 %v1886_v32, %v1884_v31 }
 0x94e   :  { %v1890_v35 = vrot.slane %v1888_v33, 4 }
 0x950   :  { %1892 = vrot.lane.b32.xlu0 %v1890_v35, %s2829_s7 }
 0x9c2   :  { %v1893_v36 = vpop.permute.xlu0 %1892 }
 0x9c3   :  { %v1895_v37 = vrot.slane %v1893_v36, 4 }
 0x9c5   :  { %v1897_v38 = vsel %vm1557_vm7, %v1888_v33, %v1895_v37 }
 0x9c6   :  { %2773 = vtanh.f32 %v1897_v38  ;;  %v2001_v3 = vrot.slane %v1897_v38, 6 }
 0x9d3   :  { %v2774_v39 = vpop.eup %2773 }
 0x9d4   :  { %v1899_v40 = vmul.f32 %v2774_v39, %v1866_v22 }
 0x9d6   :  { %v1900_v41 = vsel %vm3351_vm10, %v1899_v40, 0.0 }
 0x9d7   :  { %v1902_v42 = vrot.slane %v1900_v41, 4 }
 0x9d9   :  { %2706 = vmatmul.mubr.f32.vlgmr.msra.gmra.mxu1 %v1902_v42 }
 0xa99   :  { %v1970_v43 = vpop.f32.mrf.mxu1 }
 0xa9a   :  { %v1975_v44 = vrot.slane %v1970_v43, 2 }
 0xa9b   :  { %v2707_v45 = vpop.f32.mrf.mxu1 }
 0xa9c   :  { %v1977_v49 = vadd.f32 %v1975_v44, %v3332_v26  ;;  %v2041_v26 = vld [vmem:[%s3511_s9 + $0x78] sm:$0xff]  ;;  %s2783_s9 = scalar_lea.vmem %s2130_s21, 32 }
 0xa9d   :  { %2709 = vmatpush3.msra.mxu0 %v2041_v26  ;;  %p2784_p0 = scmp.ne.s32.totalorder %s2130_s21, %s2783_s9  ;;  %p2789_p2 = scmp.lt.s32.totalorder %s2783_s9, %s2783_s9 }
 0xa9e   :  { %v2222_v47 = vmul.f32 -1.442695, %v1977_v49  ;;  %2710 = vmatprep.subr.mxu0 %v2827_v6 }
 0xa9f   :  { %2711 = vmatpush3.msra.mxu0 %v2040_v56  ;;  %p2790_p3 = por %p2789_p2, %p2788_p1 }
 0xaa0   :  { %2775 = vpow2.f32 %v2222_v47  ;;  %2712 = vmatprep.subr.mxu0 %v2827_v6 }
 0xaa1   :  { %2777 = vtanh.f32 %v1977_v49  ;;  %2713 = vmatpush3.msra.mxu0 %v2039_v58  ;;  %p2791_p4 = pnand %p2790_p3, %p2784_p0 }
 0xaa2   :  { %2714 = vmatprep.subr.mxu0 %v2827_v6 }
 0xaa3   :  { %2715 = vmatpush3.msra.mxu0 %v2038_v60 }
 0xaa4   :  { %2716 = vmatprep.subr.mxu0 %v2827_v6 }
 0xaa5   :  { %2717 = vmatpush3.msra.mxu0 %v2037_v62 }
 0xaa6   :  { %2718 = vmatprep.subr.mxu0 %v2827_v6 }
 0xaa7   :  { %2719 = vmatpush3.msra.mxu0 %v2036_v63 }
 0xaa8   :  { %2720 = vmatprep.subr.mxu0 %v2827_v6 }
 0xaa9   :  { %2721 = vmatpush3.msra.mxu0 %v2035_v0 }
 0xaaa   :  { %2722 = vmatprep.subr.mxu0 %v2827_v6 }
 0xaab   :  { %2723 = vmatpush3.msra.mxu0 %v2034_v1 }
 0xaac   :  { %2724 = vmatprep.subr.mxu0 %v2827_v6 }
 0xaad   :  { %v2776_v48 = vpop.eup %2775  ;;  %2725 = vmatpush3.msra.mxu0 %v2033_v2 }
 0xaae   :  { %v1982_v50 = vadd.f32 1.0, %v2776_v48  ;;  %v2778_v51 = vpop.eup %2777  ;;  %2726 = vmatprep.subr.mxu0 %v2827_v6 }
 0xaaf   :  { %2727 = vmatpush3.msra.mxu0 %v2032_v5 }
 0xab0   :  { %2779 = vrcp.f32 %v1982_v50  ;;  %2728 = vmatprep.subr.mxu0 %v2827_v6 }
 0xab1   :  { %2729 = vmatpush3.msra.mxu0 %v2031_v9 }
 0xab2   :  { %2730 = vmatprep.subr.mxu0 %v2827_v6 }
 0xab3   :  { %2731 = vmatpush3.msra.mxu0 %v2030_v12 }
 0xab4   :  { %2732 = vmatprep.subr.mxu0 %v2827_v6 }
 0xab5   :  { %2733 = vmatpush3.msra.mxu0 %v2029_v13 }
 0xab6   :  { %2734 = vmatprep.subr.mxu0 %v2827_v6 }
 0xab7   :  { %2735 = vmatpush3.msra.mxu0 %v2028_v14 }
 0xab8   :  { %2736 = vmatprep.subr.mxu0 %v2827_v6 }
 0xab9   :  { %2737 = vmatpush3.msra.mxu0 %v2027_v15 }
 0xaba   :  { %2738 = vmatprep.subr.mxu0 %v2827_v6 }
 0xabb   :  { %2739 = vmatpush3.msra.mxu0 %v2026_v16 }
 0xabd   :  { %v2780_v52 = vpop.eup %2779 }
 0xabe   :  { %v3416_v53 = vsel %vm1553_vm6, %v2778_v51, %v2780_v52 }
 0xabf   :  { %v1987_v54 = vrot.slane %v3416_v53, 6  ;;  %v2003_v7 = vmul.f32 %v2001_v3, %v3416_v53 }
 0xac1   :  { %1989 = vrot.lane.b32.xlu1 %v1987_v54, %s2829_s7 }
 0xb33   :  { %v1990_v55 = vpop.permute.xlu1 %1989 }
 0xb34   :  { %v1992_v57 = vrot.slane %v1990_v55, 2 }
 0xb36   :  { %v1994_v59 = vmul.f32 %v1992_v57, %v3416_v53 }
 0xb38   :  { %v1996_v61 = vrot.slane %v1994_v59, 6 }
 0xb3a   :  { %1998 = vrot.lane.b32.xlu0 %v1996_v61, %s2830_s6 }
 0xbac   :  { %v1999_v4 = vpop.permute.xlu0 %1998 }
 0xbad   :  { %v2005_v8 = vrot.slane %v1999_v4, 2 }
 0xbaf   :  { %v2007_v11 = vadd.f32 %v2005_v8, %v2003_v7 }
 0xbb1   :  { %v2009_v10 = vrot.slane %v2007_v11, 6 }
 0xbb3   :  { %2011 = vrot.lane.b32.xlu1 %v2009_v10, %s2829_s7 }
 0xc25   :  { %v2012_v17 = vpop.permute.xlu1 %2011 }
 0xc26   :  { %v2014_v18 = vrot.slane %v2012_v17, 2 }
 0xc28   :  { %v2016_v19 = vsel %vm1557_vm7, %v2007_v11, %v2014_v18 }
 0xc29   :  { %2781 = vtanh.f32 %v2016_v19 }
 0xc36   :  { %v2782_v20 = vpop.eup %2781 }
 0xc37   :  { %v2018_v21 = vmul.f32 %v2782_v20, %v3416_v53 }
 0xc39   :  { %v2019_v22 = vsel %vm3351_vm10, %v2018_v21, 0.0 }
 0xc3a   :  { %2021 = vrot.lane.b32.xlu0 %v2019_v22, %s2829_s7  ;;  %v2049_v6 = vrot.slane %v2019_v22, 6 }
 0xc3c   :  { %2741 = vmatmul.mubr.f32.vlgmr.msra.gmra.mxu0 %v2049_v6 }
 0xcac   :  { %v2022_v23 = vpop.permute.xlu0 %2021 }
 0xcad   :  { %2025 = vst.msk [vmem:[#allocation2 - $0x6] sm:$0xc0] %vm2024_vm11, %v2022_v23 }
 0xcae   :  { %2794 = shalt.err (!%p2791_p4)
}
 0xcaf   :  { %2132 = dma.vmem_to_hbm [thread:$0]  %s2130_s21, 32, %s3513_s11, [#allocation3]   ;;  %v2223_v34 = vld [vmem:[%s3512_s10] ss:$0 sm:$0xff]  ;;  %vm2121_vm12 = vcmask 58368  }
 0xcb0   :  { %s2832_s0 = smov [#allocation4]  }
 0xcb1   :  { %s2139_s2 = sshll.u32 %s2832_s0, 4  ;;  %s2140_s2 = int_to_ptr.vmem [resolvable:$true] %s2139_s2 }
 0xcb2   :  { %s2803_s3 = scalar_lea.vmem %s2140_s2, 32  ;;  %p2808_p6 = scmp.lt.s32.totalorder %s2140_s2, %s2140_s2 }
 0xcb3   :  { %p2804_p5 = scmp.ne.s32.totalorder %s2140_s2, %s2803_s3  ;;  %p2809_p7 = scmp.lt.s32.totalorder %s2803_s3, %s2803_s3 }
 0xcb5   :  { %p2810_p8 = por %p2809_p7, %p2808_p6 }
 0xcb7   :  { %p2811_p9 = pnand %p2810_p8, %p2804_p5 }
 0xcfc   :  { %v2117_v46 = vpop.f32.mrf.mxu0 }
 0xcfd   :  { %v2118_v24 = vadd.f32 %v2223_v34, %v2117_v46 }
 0xcfe   :  { %v2742_v25 = vpop.f32.mrf.mxu0 }
 0xcff   :  { %2122 = vst.msk [vmem:[#allocation4] sm:$0x3] %vm2121_vm12, %v2118_v24 }
 0xd00   :  { %2814 = shalt.err (!%p2811_p9)
}
 0xd01   :  { %2142 = dma.vmem_to_hbm [thread:$0]  %s2140_s2, 32, %s3514_s12, [#allocation5]  }
 0xd02   :  { %2823 = dma.done.wait [#allocation3], 32  }
 0xd03   :  { %2824 = vsyncadd [#allocation3], 4294967264 }
 0xd04   :  { %2825 = dma.done.wait [#allocation5], 32  }
 0xd05   :  { %2826 = vsyncadd [#allocation5], 4294967264 }
 0xd06   :  { %2149 = vsyncpa [#allocation3], 1 }
 0xd07   :  { %2150 = vsyncpa [#allocation5], 1 }

</bundles_post_ra>
